<compile_context>
chip_gen: v7x
topology: tpu7x:2x2x1
jax: 0.10.0
libtpu: 0.0.40
codegen_flags: <defaults>
</compile_context>

<pallas_src>
import jax
import jax.numpy as jnp
from jax import lax
from jax.experimental import pallas as pl
from jax.experimental.pallas import tpu as pltpu


_MXU_DTYPE = jnp.bfloat16    # MXU matmul-input dtype (f32 accumulation on the MXU)
_ACT_DTYPE = jnp.bfloat16    # inter-pass activation dtype in HBM (perf review item 1)
_PAD_DTYPE = jnp.float32     # halo-padded VMEM scratch dtype (proven lowering path)
# TODO(synk): move the pad scratch to bf16 once unaligned packed sub-tile stores are
#             verified on all target generations (would halve im2col/halo VMEM traffic).


def _zero_halo(pad_ref, H, W):
    """Zero only the 1-pixel halo of the (1, H+2, W+2, C) scratch (not the interior).

    Intentionally NOT gated behind @pl.when(program_id(0) == 0): with the batch axis
    marked "parallel" each TensorCore owns a private scratch on megacore parts (v7x),
    so only one core would ever see iteration 0 and the other core's halo would stay
    uninitialized.  The four 1-px strips are ~4/H of the interior write — negligible.
    """
    C = pad_ref.shape[-1]
    dt = pad_ref.dtype
    row = jnp.zeros((1, 1, W + 2, C), dt)
    col = jnp.zeros((1, H + 2, 1, C), dt)
    pad_ref[:, 0:1, :, :] = row
    pad_ref[:, H + 1:H + 2, :, :] = row
    pad_ref[:, :, 0:1, :] = col
    pad_ref[:, :, W + 1:W + 2, :] = col


def _im2col_3x3(pad_ref, H, W):
    """Gather the 9 taps of a 3x3 / stride-1 conv into one (H*W, 9*C) bf16 patch matrix.

    Each slice is cast to bf16 BEFORE the concatenate so the patch matrix is built
    directly in bf16 (half the copy bytes / live VMEM of an f32 build-then-cast).
    Column order (kh, kw, c) matches the wrapper's (9*C, Cout) weight reshape.
    """
    C = pad_ref.shape[-1]
    cols = []
    for kh in range(3):
        for kw in range(3):
            cols.append(pad_ref[:, kh:kh + H, kw:kw + W, :]
                        .reshape(H * W, C).astype(_MXU_DTYPE))
    # TODO(synk): v5e — replace the 9 sublane-unaligned slice copies with a
    #             pltpu.roll-based gather on a single aligned load (XLU slot).
    return jnp.concatenate(cols, axis=-1)


def _write_stats(stats_ref, acc, count):
    """Per-tile BN partials: stats[:,0,:] = sum, stats[:,1,:] = CENTERED sum of squares."""
    C = acc.shape[-1]
    s = jnp.sum(acc, axis=0, keepdims=True)                 # (1, C) f32
    mu = s * (1.0 / count)
    d = acc - mu
    m2 = jnp.sum(d * d, axis=0, keepdims=True)              # (1, C) f32
    stats_ref[:, 0:1, :] = s.reshape(1, 1, C)
    stats_ref[:, 1:2, :] = m2.reshape(1, 1, C)


def _conv1_kernel(x_ref, w1_ref, c1_ref, stats_ref, pad_ref):
    """conv1 for one batch element + BN1 partial stats."""
    _, H, W, _ = x_ref.shape
    Cout = w1_ref.shape[-1]
    _zero_halo(pad_ref, H, W)                               # halo strips only; interior overwritten
    pad_ref[:, 1:H + 1, 1:W + 1, :] = x_ref[...].astype(_PAD_DTYPE)
    patches = _im2col_3x3(pad_ref, H, W)                    # (H*W, 9*Cin) bf16
    acc = jnp.dot(patches, w1_ref[...],
                  preferred_element_type=jnp.float32)       # single MXU matmul, K = 9*Cin
    c1_ref[...] = acc.astype(c1_ref.dtype).reshape(1, H, W, Cout)   # bf16 writeback (half HBM bytes)
    _write_stats(stats_ref, acc, H * W)


def _conv2_kernel(c1_ref, scale1_ref, shift1_ref, w2_ref, c2_ref, stats_ref, pad_ref):
    """bn1 + relu + conv2 for one batch element + BN2 partial stats."""
    _, H, W, C = c1_ref.shape
    Cout = w2_ref.shape[-1]
    _zero_halo(pad_ref, H, W)
    y1 = c1_ref[...].astype(jnp.float32).reshape(H * W, C)
    y1 = jnp.maximum(y1 * scale1_ref[...] + shift1_ref[...], 0.0)   # bn1 + relu (f32)
    pad_ref[:, 1:H + 1, 1:W + 1, :] = y1.reshape(1, H, W, C)
    patches = _im2col_3x3(pad_ref, H, W)                    # (H*W, 9*Cmid) bf16
    acc = jnp.dot(patches, w2_ref[...],
                  preferred_element_type=jnp.float32)       # single MXU matmul, K = 9*Cmid
    c2_ref[...] = acc.astype(c2_ref.dtype).reshape(1, H, W, Cout)   # bf16 writeback
    _write_stats(stats_ref, acc, H * W)


def _finalize_bn(stats, per_tile_count, gamma, beta, eps):
    """Combine per-tile (sum, centered SSQ) into a global BN affine (Chan et al. merge)."""
    sums = stats[:, 0, :]                                   # (n_tiles, C)
    m2s = stats[:, 1, :]                                    # (n_tiles, C)
    n_tiles = stats.shape[0]
    total = float(per_tile_count) * n_tiles
    mean_i = sums / per_tile_count
    mean = jnp.sum(sums, axis=0) / total
    m2 = jnp.sum(m2s, axis=0) + per_tile_count * jnp.sum((mean_i - mean[None, :]) ** 2, axis=0)
    var = m2 / total                                        # biased, like training-mode BN
    scale = gamma * lax.rsqrt(var + eps)
    shift = beta - mean * scale
    return scale, shift


def _vmem_limit_bytes():
    """~3/4 of physical VMEM: ≈96 MiB on v5e/v6e (128 MiB), ≈48 MiB on v7x (64 MiB)."""
    try:
        cap = pltpu.get_tpu_info().vmem_capacity_bytes
    except Exception:
        cap = 64 * 1024 * 1024
    return int(min(100 * 1024 * 1024, (cap * 3) // 4))


def basic_block_forward(x_nchw, w1_oihw, w2_oihw, g1, b1, g2, b2, eps=1e-5):
    """BasicBlock forward. NCHW / OIHW (PyTorch conventions) in, NCHW f32 out. stride=1."""
    # NHWC activations, bf16 in HBM (they feed a bf16 MXU matmul anyway).
    x = jnp.transpose(x_nchw, (0, 2, 3, 1)).astype(_ACT_DTYPE)
    # HWIO, then fold the 3x3 taps into the contraction dim: (9*Cin, Cout), bf16.
    w1 = jnp.transpose(w1_oihw, (2, 3, 1, 0)).reshape(-1, w1_oihw.shape[0]).astype(_MXU_DTYPE)
    w2 = jnp.transpose(w2_oihw, (2, 3, 1, 0)).reshape(-1, w2_oihw.shape[0]).astype(_MXU_DTYPE)

    N, H, W, Cin = x.shape
    Cmid = w1.shape[-1]
    hw = H * W

    cparams = pltpu.CompilerParams(
        dimension_semantics=("parallel",),          # batch tiles independent -> megacore split
        vmem_limit_bytes=_vmem_limit_bytes())
    # TODO(synk): add an H-tile grid axis (grid=(N, H//TH), halo rows via Element offsets
    #             or a manual DMA from a pl.ANY input) so per-step VMEM stays bounded on
    #             v7x's 64 MiB and the 2-TensorCore split balances when N is small/odd.
    # TODO(synk): when C < 128, carry a lane-dense folded (1, H, W*C) layout through the
    #             c1/c2 stores (or pad Cout toward 128) so stores are unmasked vst and the
    #             MXU N-dimension is better filled on v6e/v7x.

    cost_a = pl.CostEstimate(
        flops=2 * N * hw * (9 * Cin) * Cmid,
        transcendentals=0,
        bytes_accessed=(N * hw * Cin + 9 * Cin * Cmid + N * hw * Cmid) * 2 + N * 2 * Cmid * 4)
    cost_b = pl.CostEstimate(
        flops=2 * N * hw * (9 * Cmid) * Cmid + 3 * N * hw * Cmid,
        transcendentals=0,
        bytes_accessed=(2 * N * hw * Cmid + 9 * Cmid * Cmid) * 2 + (N * 2 * Cmid + 2 * Cmid) * 4)

    # ---- pass A: conv1 (+ BN1 partial stats), batch-tiled & pipelined ----------------
    c1, stats1 = pl.pallas_call(
        _conv1_kernel,
        out_shape=(jax.ShapeDtypeStruct((N, H, W, Cmid), _ACT_DTYPE),
                   jax.ShapeDtypeStruct((N, 2, Cmid), jnp.float32)),
        grid=(N,),
        in_specs=[pl.BlockSpec((1, H, W, Cin), lambda n: (n, 0, 0, 0)),
                  pl.BlockSpec(w1.shape, lambda n: (0, 0))],
        out_specs=[pl.BlockSpec((1, H, W, Cmid), lambda n: (n, 0, 0, 0)),
                   pl.BlockSpec((1, 2, Cmid), lambda n: (n, 0, 0))],
        scratch_shapes=[pltpu.VMEM((1, H + 2, W + 2, Cin), _PAD_DTYPE)],
        compiler_params=cparams,
        cost_estimate=cost_a,
    )(x, w1)

    scale1, shift1 = _finalize_bn(stats1, float(hw), g1.astype(jnp.float32),
                                  b1.astype(jnp.float32), eps)

    # ---- pass B: bn1 + relu + conv2 (+ BN2 partial stats) -----------------------------
    c2, stats2 = pl.pallas_call(
        _conv2_kernel,
        out_shape=(jax.ShapeDtypeStruct((N, H, W, Cmid), _ACT_DTYPE),
                   jax.ShapeDtypeStruct((N, 2, Cmid), jnp.float32)),
        grid=(N,),
        in_specs=[pl.BlockSpec((1, H, W, Cmid), lambda n: (n, 0, 0, 0)),
                  pl.BlockSpec((1, Cmid), lambda n: (0, 0)),
                  pl.BlockSpec((1, Cmid), lambda n: (0, 0)),
                  pl.BlockSpec(w2.shape, lambda n: (0, 0))],
        out_specs=[pl.BlockSpec((1, H, W, Cmid), lambda n: (n, 0, 0, 0)),
                   pl.BlockSpec((1, 2, Cmid), lambda n: (n, 0, 0))],
        scratch_shapes=[pltpu.VMEM((1, H + 2, W + 2, Cmid), _PAD_DTYPE)],
        compiler_params=cparams,
        cost_estimate=cost_b,
    )(c1, scale1.reshape(1, Cmid), shift1.reshape(1, Cmid), w2)

    scale2, shift2 = _finalize_bn(stats2, float(hw), g2.astype(jnp.float32),
                                  b2.astype(jnp.float32), eps)

    # ---- epilogue: bn2 + relu + NCHW transpose as ONE fused XLA op --------------------
    # (Perf review: the previous Pallas pass C plus jnp.transpose cost an extra full HBM
    #  round trip; fusing the per-channel affine, relu and the layout change reads c2
    #  (bf16) once and writes the f32 NCHW output once.)
    y2 = jnp.maximum(c2.astype(jnp.float32) * scale2.reshape(1, 1, 1, Cmid)
                     + shift2.reshape(1, 1, 1, Cmid), 0.0)
    return jnp.transpose(y2, (0, 3, 1, 2))


def _reference_forward(x, w1, w2, g1, b1, g2, b2, eps=1e-5):
    """Pure-JAX f32 reference (NCHW/OIHW), training-mode BatchNorm."""
    def conv(inp, w):
        return lax.conv_general_dilated(
            inp, w, window_strides=(1, 1), padding=((1, 1), (1, 1)),
            dimension_numbers=("NCHW", "OIHW", "NCHW"))

    def bn(inp, g, b):
        mean = inp.mean(axis=(0, 2, 3), keepdims=True)
        var = inp.var(axis=(0, 2, 3), keepdims=True)   # biased, like training-mode BN
        return (inp - mean) / jnp.sqrt(var + eps) * g.reshape(1, -1, 1, 1) \
            + b.reshape(1, -1, 1, 1)

    out = jax.nn.relu(bn(conv(x, w1), g1, b1))
    out = jax.nn.relu(bn(conv(out, w2), g2, b2))
    return out


if __name__ == "__main__":
    key = jax.random.PRNGKey(0)
    k_x, k_w1, k_w2, k_g1, k_b1, k_g2, k_b2 = jax.random.split(key, 7)

    N, inplanes, planes, HW = 2, 4, 8, 16

    x = jax.random.normal(k_x, (N, inplanes, HW, HW), jnp.float32)
    w1 = 0.1 * jax.random.normal(k_w1, (planes, inplanes, 3, 3), jnp.float32)   # OIHW
    w2 = 0.1 * jax.random.normal(k_w2, (planes, planes, 3, 3), jnp.float32)     # OIHW
    g1 = 1.0 + 0.1 * jax.random.normal(k_g1, (planes,), jnp.float32)
    b1 = 0.1 * jax.random.normal(k_b1, (planes,), jnp.float32)
    g2 = 1.0 + 0.1 * jax.random.normal(k_g2, (planes,), jnp.float32)
    b2 = 0.1 * jax.random.normal(k_b2, (planes,), jnp.float32)

    out = jax.block_until_ready(basic_block_forward(x, w1, w2, g1, b1, g2, b2))
    ref = jax.block_until_ready(_reference_forward(x, w1, w2, g1, b1, g2, b2))

    assert out.shape == (N, planes, HW, HW), out.shape
    # bf16 MXU inputs + bf16 inter-pass activations (f32 accumulation / BN math)
    # vs a pure-f32 reference -> small mixed-precision error.
    assert jnp.allclose(out, ref, atol=4e-2, rtol=4e-2), \
        f"max abs err {jnp.max(jnp.abs(out - ref))}"

    print("KERNEL_OK")
</pallas_src>

<mosaic_0001>
module attributes {stable_mosaic.version = 11 : i64} {
  func.func @_conv1_kernel(%arg0: i32, %arg1: memref<1x16x16x4xbf16, #tpu.memory_space<vmem>>, %arg2: memref<36x8xbf16, #tpu.memory_space<vmem>>, %arg3: memref<1x16x16x8xbf16, #tpu.memory_space<vmem>>, %arg4: memref<1x2x8xf32, #tpu.memory_space<vmem>>, %arg5: memref<1x18x18x4xf32, #tpu.memory_space<vmem>>) attributes {dimension_semantics = [#tpu.dimension_semantics<parallel>], iteration_bounds = array<i64: 2>, scalar_prefetch = 0 : i64, scratch_operands = 1 : i64, tpu.core_type = #tpu.core_type<tc>, window_params = [{transform_indices = @transform_0, window_bounds = array<i64: 1, 16, 16, 4>}, {pipeline_mode = #tpu.pipeline_mode<synchronous>, transform_indices = @transform_1, window_bounds = array<i64: 36, 8>}, {transform_indices = @transform_2, window_bounds = array<i64: 1, 16, 16, 8>}, {transform_indices = @transform_3, window_bounds = array<i64: 1, 2, 8>}]} {
    %cst = arith.constant 0.000000e+00 : f32
    %0 = vector.broadcast %cst : f32 to vector<1x1x18x4xf32>
    %cst_0 = arith.constant 0.000000e+00 : f32
    %1 = vector.broadcast %cst_0 : f32 to vector<1x18x1x4xf32>
    %c0 = arith.constant 0 : index
    %c0_1 = arith.constant 0 : index
    %c0_2 = arith.constant 0 : index
    %c0_3 = arith.constant 0 : index
    %2 = vector.load %arg5[%c0, %c0_1, %c0_2, %c0_3] : memref<1x18x18x4xf32, #tpu.memory_space<vmem>>, vector<1x1x18x4xf32>
    tpu.vector_store %arg5[%c0, %c0_1, %c0_2, %c0_3], %0 {strides = array<i32>} : memref<1x18x18x4xf32, #tpu.memory_space<vmem>>, vector<1x1x18x4xf32>,
    %c0_4 = arith.constant 0 : index
    %c17 = arith.constant 17 : index
    %c0_5 = arith.constant 0 : index
    %c0_6 = arith.constant 0 : index
    %3 = vector.load %arg5[%c0_4, %c17, %c0_5, %c0_6] : memref<1x18x18x4xf32, #tpu.memory_space<vmem>>, vector<1x1x18x4xf32>
    tpu.vector_store %arg5[%c0_4, %c17, %c0_5, %c0_6], %0 {strides = array<i32>} : memref<1x18x18x4xf32, #tpu.memory_space<vmem>>, vector<1x1x18x4xf32>,
    %c0_7 = arith.constant 0 : index
    %c0_8 = arith.constant 0 : index
    %c0_9 = arith.constant 0 : index
    %c0_10 = arith.constant 0 : index
    %4 = vector.load %arg5[%c0_7, %c0_8, %c0_9, %c0_10] : memref<1x18x18x4xf32, #tpu.memory_space<vmem>>, vector<1x18x1x4xf32>
    tpu.vector_store %arg5[%c0_7, %c0_8, %c0_9, %c0_10], %1 {strides = array<i32>} : memref<1x18x18x4xf32, #tpu.memory_space<vmem>>, vector<1x18x1x4xf32>,
    %c0_11 = arith.constant 0 : index
    %c0_12 = arith.constant 0 : index
    %c17_13 = arith.constant 17 : index
    %c0_14 = arith.constant 0 : index
    %5 = vector.load %arg5[%c0_11, %c0_12, %c17_13, %c0_14] : memref<1x18x18x4xf32, #tpu.memory_space<vmem>>, vector<1x18x1x4xf32>
    tpu.vector_store %arg5[%c0_11, %c0_12, %c17_13, %c0_14], %1 {strides = array<i32>} : memref<1x18x18x4xf32, #tpu.memory_space<vmem>>, vector<1x18x1x4xf32>,
    %c0_15 = arith.constant 0 : index
    %c0_16 = arith.constant 0 : index
    %c0_17 = arith.constant 0 : index
    %c0_18 = arith.constant 0 : index
    %6 = vector.load %arg1[%c0_15, %c0_16, %c0_17, %c0_18] : memref<1x16x16x4xbf16, #tpu.memory_space<vmem>>, vector<1x16x16x4xbf16>
    %7 = arith.extf %6 : vector<1x16x16x4xbf16> to vector<1x16x16x4xf32>
    %c0_19 = arith.constant 0 : index
    %c1 = arith.constant 1 : index
    %c1_20 = arith.constant 1 : index
    %c0_21 = arith.constant 0 : index
    %8 = vector.load %arg5[%c0_19, %c1, %c1_20, %c0_21] : memref<1x18x18x4xf32, #tpu.memory_space<vmem>>, vector<1x16x16x4xf32>
    tpu.vector_store %arg5[%c0_19, %c1, %c1_20, %c0_21], %7 {strides = array<i32>} : memref<1x18x18x4xf32, #tpu.memory_space<vmem>>, vector<1x16x16x4xf32>,
    %c0_22 = arith.constant 0 : index
    %c0_23 = arith.constant 0 : index
    %c0_24 = arith.constant 0 : index
    %c0_25 = arith.constant 0 : index
    %9 = vector.load %arg5[%c0_22, %c0_23, %c0_24, %c0_25] : memref<1x18x18x4xf32, #tpu.memory_space<vmem>>, vector<1x16x16x4xf32>
    %10 = vector.shape_cast %9 : vector<1x16x16x4xf32> to vector<256x4xf32>
    %11 = arith.truncf %10 : vector<256x4xf32> to vector<256x4xbf16>
    %c0_26 = arith.constant 0 : index
    %c0_27 = arith.constant 0 : index
    %c1_28 = arith.constant 1 : index
    %c0_29 = arith.constant 0 : index
    %12 = vector.load %arg5[%c0_26, %c0_27, %c1_28, %c0_29] : memref<1x18x18x4xf32, #tpu.memory_space<vmem>>, vector<1x16x16x4xf32>
    %13 = vector.shape_cast %12 : vector<1x16x16x4xf32> to vector<256x4xf32>
    %14 = arith.truncf %13 : vector<256x4xf32> to vector<256x4xbf16>
    %c0_30 = arith.constant 0 : index
    %c0_31 = arith.constant 0 : index
    %c2 = arith.constant 2 : index
    %c0_32 = arith.constant 0 : index
    %15 = vector.load %arg5[%c0_30, %c0_31, %c2, %c0_32] : memref<1x18x18x4xf32, #tpu.memory_space<vmem>>, vector<1x16x16x4xf32>
    %16 = vector.shape_cast %15 : vector<1x16x16x4xf32> to vector<256x4xf32>
    %17 = arith.truncf %16 : vector<256x4xf32> to vector<256x4xbf16>
    %c0_33 = arith.constant 0 : index
    %c1_34 = arith.constant 1 : index
    %c0_35 = arith.constant 0 : index
    %c0_36 = arith.constant 0 : index
    %18 = vector.load %arg5[%c0_33, %c1_34, %c0_35, %c0_36] : memref<1x18x18x4xf32, #tpu.memory_space<vmem>>, vector<1x16x16x4xf32>
    %19 = vector.shape_cast %18 : vector<1x16x16x4xf32> to vector<256x4xf32>
    %20 = arith.truncf %19 : vector<256x4xf32> to vector<256x4xbf16>
    %c0_37 = arith.constant 0 : index
    %c1_38 = arith.constant 1 : index
    %c1_39 = arith.constant 1 : index
    %c0_40 = arith.constant 0 : index
    %21 = vector.load %arg5[%c0_37, %c1_38, %c1_39, %c0_40] : memref<1x18x18x4xf32, #tpu.memory_space<vmem>>, vector<1x16x16x4xf32>
    %22 = vector.shape_cast %21 : vector<1x16x16x4xf32> to vector<256x4xf32>
    %23 = arith.truncf %22 : vector<256x4xf32> to vector<256x4xbf16>
    %c0_41 = arith.constant 0 : index
    %c1_42 = arith.constant 1 : index
    %c2_43 = arith.constant 2 : index
    %c0_44 = arith.constant 0 : index
    %24 = vector.load %arg5[%c0_41, %c1_42, %c2_43, %c0_44] : memref<1x18x18x4xf32, #tpu.memory_space<vmem>>, vector<1x16x16x4xf32>
    %25 = vector.shape_cast %24 : vector<1x16x16x4xf32> to vector<256x4xf32>
    %26 = arith.truncf %25 : vector<256x4xf32> to vector<256x4xbf16>
    %c0_45 = arith.constant 0 : index
    %c2_46 = arith.constant 2 : index
    %c0_47 = arith.constant 0 : index
    %c0_48 = arith.constant 0 : index
    %27 = vector.load %arg5[%c0_45, %c2_46, %c0_47, %c0_48] : memref<1x18x18x4xf32, #tpu.memory_space<vmem>>, vector<1x16x16x4xf32>
    %28 = vector.shape_cast %27 : vector<1x16x16x4xf32> to vector<256x4xf32>
    %29 = arith.truncf %28 : vector<256x4xf32> to vector<256x4xbf16>
    %c0_49 = arith.constant 0 : index
    %c2_50 = arith.constant 2 : index
    %c1_51 = arith.constant 1 : index
    %c0_52 = arith.constant 0 : index
    %30 = vector.load %arg5[%c0_49, %c2_50, %c1_51, %c0_52] : memref<1x18x18x4xf32, #tpu.memory_space<vmem>>, vector<1x16x16x4xf32>
    %31 = vector.shape_cast %30 : vector<1x16x16x4xf32> to vector<256x4xf32>
    %32 = arith.truncf %31 : vector<256x4xf32> to vector<256x4xbf16>
    %c0_53 = arith.constant 0 : index
    %c2_54 = arith.constant 2 : index
    %c2_55 = arith.constant 2 : index
    %c0_56 = arith.constant 0 : index
    %33 = vector.load %arg5[%c0_53, %c2_54, %c2_55, %c0_56] : memref<1x18x18x4xf32, #tpu.memory_space<vmem>>, vector<1x16x16x4xf32>
    %34 = vector.shape_cast %33 : vector<1x16x16x4xf32> to vector<256x4xf32>
    %35 = arith.truncf %34 : vector<256x4xf32> to vector<256x4xbf16>
    %36 = tpu.concatenate %11, %14, %17, %20, %23, %26, %29, %32, %35 in 1 : vector<256x4xbf16>, vector<256x4xbf16>, vector<256x4xbf16>, vector<256x4xbf16>, vector<256x4xbf16>, vector<256x4xbf16>, vector<256x4xbf16>, vector<256x4xbf16>, vector<256x4xbf16> -> vector<256x36xbf16>
    %c0_57 = arith.constant 0 : index
    %c0_58 = arith.constant 0 : index
    %37 = vector.load %arg2[%c0_57, %c0_58] : memref<36x8xbf16, #tpu.memory_space<vmem>>, vector<36x8xbf16>
    %cst_59 = arith.constant dense<0.000000e+00> : vector<256x8xf32>
    %38 = tpu.matmul %36, %37, %cst_59 {dimension_numbers = #tpu.dot_dimension_numbers<[1], [0], [0], [1], [0, 0, 1, 1], [], []>} : vector<256x36xbf16>, vector<36x8xbf16>, vector<256x8xf32> -> vector<256x8xf32>
    %39 = arith.truncf %38 : vector<256x8xf32> to vector<256x8xbf16>
    %40 = vector.shape_cast %39 : vector<256x8xbf16> to vector<1x16x16x8xbf16>
    %c0_60 = arith.constant 0 : index
    %c0_61 = arith.constant 0 : index
    %c0_62 = arith.constant 0 : index
    %c0_63 = arith.constant 0 : index
    %41 = vector.load %arg3[%c0_60, %c0_61, %c0_62, %c0_63] : memref<1x16x16x8xbf16, #tpu.memory_space<vmem>>, vector<1x16x16x8xbf16>
    tpu.vector_store %arg3[%c0_60, %c0_61, %c0_62, %c0_63], %40 {strides = array<i32>} : memref<1x16x16x8xbf16, #tpu.memory_space<vmem>>, vector<1x16x16x8xbf16>,
    %cst_64 = arith.constant dense<0.000000e+00> : vector<8xf32>
    %42 = vector.multi_reduction <add>, %38, %cst_64 [0] : vector<256x8xf32> to vector<8xf32>
    %43 = vector.shape_cast %42 : vector<8xf32> to vector<1x8xf32>
    %cst_65 = arith.constant 3.906250e-03 : f32
    %44 = vector.broadcast %cst_65 : f32 to vector<1x8xf32>
    %45 = arith.mulf %43, %44 : vector<1x8xf32>
    %46 = vector.broadcast %45 : vector<1x8xf32> to vector<256x8xf32>
    %47 = arith.subf %38, %46 : vector<256x8xf32>
    %48 = arith.mulf %47, %47 : vector<256x8xf32>
    %cst_66 = arith.constant dense<0.000000e+00> : vector<8xf32>
    %49 = vector.multi_reduction <add>, %48, %cst_66 [0] : vector<256x8xf32> to vector<8xf32>
    %50 = vector.shape_cast %49 : vector<8xf32> to vector<1x8xf32>
    %51 = vector.shape_cast %43 : vector<1x8xf32> to vector<1x1x8xf32>
    %c0_67 = arith.constant 0 : index
    %c0_68 = arith.constant 0 : index
    %c0_69 = arith.constant 0 : index
    %52 = vector.load %arg4[%c0_67, %c0_68, %c0_69] : memref<1x2x8xf32, #tpu.memory_space<vmem>>, vector<1x1x8xf32>
    tpu.vector_store %arg4[%c0_67, %c0_68, %c0_69], %51 {strides = array<i32>} : memref<1x2x8xf32, #tpu.memory_space<vmem>>, vector<1x1x8xf32>,
    %53 = vector.shape_cast %50 : vector<1x8xf32> to vector<1x1x8xf32>
    %c0_70 = arith.constant 0 : index
    %c1_71 = arith.constant 1 : index
    %c0_72 = arith.constant 0 : index
    %54 = vector.load %arg4[%c0_70, %c1_71, %c0_72] : memref<1x2x8xf32, #tpu.memory_space<vmem>>, vector<1x1x8xf32>
    tpu.vector_store %arg4[%c0_70, %c1_71, %c0_72], %53 {strides = array<i32>} : memref<1x2x8xf32, #tpu.memory_space<vmem>>, vector<1x1x8xf32>,
    return
  }
  func.func @transform_0(%arg0: i32) -> (i32, i32, i32, i32) {
    %c0_i32 = arith.constant 0 : i32
    %c0_i32_0 = arith.constant 0 : i32
    %c0_i32_1 = arith.constant 0 : i32
    %c0_i32_2 = arith.constant 0 : i32
    return %arg0, %c0_i32, %c0_i32_0, %c0_i32_1 : i32, i32, i32, i32
  }
  func.func @transform_1(%arg0: i32) -> (i32, i32) {
    %c0_i32 = arith.constant 0 : i32
    %c0_i32_0 = arith.constant 0 : i32
    %c0_i32_1 = arith.constant 0 : i32
    return %c0_i32, %c0_i32_0 : i32, i32
  }
  func.func @transform_2(%arg0: i32) -> (i32, i32, i32, i32) {
    %c0_i32 = arith.constant 0 : i32
    %c0_i32_0 = arith.constant 0 : i32
    %c0_i32_1 = arith.constant 0 : i32
    %c0_i32_2 = arith.constant 0 : i32
    return %arg0, %c0_i32, %c0_i32_0, %c0_i32_1 : i32, i32, i32, i32
  }
  func.func @transform_3(%arg0: i32) -> (i32, i32, i32) {
    %c0_i32 = arith.constant 0 : i32
    %c0_i32_0 = arith.constant 0 : i32
    %c0_i32_1 = arith.constant 0 : i32
    return %arg0, %c0_i32, %c0_i32_0 : i32, i32, i32
  }
}

</mosaic_0001>

<bundles_post_ra>
// kernel: tpu_custom_call.1
= control target key start
LH: loop header
LB: loop body
LE: loop exit
PB: predicated region body
PF: predicated region fallthrough
CT: control target
= control target key end

     0   :  { %9 = vsyncpa [#allocation4], 0  ;;  %s3420_s0 = inlined_call_operand.vmem [shape: bf16[2,16,16,4], index: 0, kind: input, shape index: {}]   ;;  %s3421_s1 = inlined_call_operand.vmem [shape: bf16[36,8], index: 1, kind: input, shape index: {}]   ;;  %s3422_s2 = inlined_call_operand.vmem [shape: bf16[2,16,16,8], index: 2, kind: output, shape index: {0}]   ;;  %s3423_s3 = inlined_call_operand.hbm [shape: f32[2,2,8], index: 3, kind: output, shape index: {1}]  }
   0x1   :  { %11 = vsyncpa [#allocation4 + $0x1], 0  ;;  %s2500_s12 = smov 0   ;;  %s2502_s13 = smov 0  }
   0x2   :  { %s2504_s14 = smov 0   ;;  %s2506_s15 = smov 0  }
   0x3 LB: > { %s2521_s16 = sadd.s32 4294967295, %s2468_s15   ;;  %s2113_s17 = sadd.s32 4294967294, %s2468_s15   ;;  %s2468_s15 = sphi %s2506_s15, %s3429_s15   ;;  %s2464_s14 = sphi %s2504_s14, %s3428_s14   ;;  %s2460_s13 = sphi %s2502_s13, %s3427_s13   ;;  %s2456_s12 = sphi %s2500_s12, %s3426_s12  }
   0x4   : > { %s2525_s18 = sadd.s32 1, %s2468_s15   ;;  %s97_s19 = sadd.s32 1, %s2464_s14 }
   0x5   : > { %s94_s20 = ssub.s32 %s2468_s15, %s2525_s18  ;;  %p107_p0 = scmp.ne.s32.totalorder %s2464_s14, %s2460_s13 }
   0x6   : > { %p95_p1 = scmp.eq.s32.totalorder %s94_s20, 0  ;;  %p108_p2 = scmp.eq.s32.totalorder %s2521_s16, 1 }
   0x7   : > { %p113_p3 = scmp.ne.s32.totalorder %s2460_s13, %s2456_s12  ;;  %p114_p4 = scmp.eq.s32.totalorder %s2113_s17, 1 }
   0x8   : > { %s2536_s21 = scalar_select %p95_p1, %s2464_s14, %s97_s19  }
   0x9   : > { %p2538_p5 = por %p108_p2, %p107_p0  ;;  %p2542_p6 = por %p114_p4, %p113_p3 }
   0xa   : > { %p2116_p7 = scmp.ge.s32.totalorder %s2468_s15, 1  ;;  %p143_p8 = scmp.lt.s32.totalorder %s2468_s15, 3 }
   0xc   : > { %p144_p9 = pnand %p2116_p7, %p143_p8 }
   0xd   : > { %vm183_vm0 = vcmask (!%p144_p9), 31744   ;;  %vm186_vm1 = vcmask (!%p144_p9), 25600   ;;  %vm192_vm2 = vcmask (!%p144_p9), 24576   ;;  %v2470_v0 = vmov (!%p144_p9), 0.0   ;;  %p172_p10 = scmp.lt.s32.totalorder (!%p144_p9), %s2521_s16, 1  ;;  %s2471_s29 = smov (!%p144_p9), 4  }
   0xe   : > { %147 = sbr.rel (%p144_p9) target bundleno = 746 (0x2ea), region = 28  ;;  %184 = vst.msk [vmem:[#allocation2] sm:$0xff] (!%p144_p9), %vm183_vm0, %v2470_v0  ;;  %185 = vst.msk [vmem:[#allocation2 + $0x8] sm:$0xff] (!%p144_p9), %vm183_vm0, %v2470_v0  ;;  %s2472_s30 = smov (!%p144_p9), 8   ;;  %v2403_v60 = vld [vmem:[%s3421_s1] sm:$0xff] (!%p144_p9)   ;;  %v2404_v62 = vld [vmem:[%s3421_s1 + $0x8] sm:$0xff] (!%p144_p9)  }
   0xf   : > { %187 = vst.msk [vmem:[#allocation2 + $0x10] sm:$0x3] (!%p144_p9), %vm186_vm1, %v2470_v0  ;;  %191 = vst.msk [vmem:[#allocation2 + $0x1a8] sm:$0x3] (!%p144_p9), %vm186_vm1, %v2470_v0  ;;  %s2473_s4 = smov (!%p144_p9), 12   ;;  %s2474_s5 = smov (!%p144_p9), 16   ;;  %2309 = vmatprep.subr.bf16.mxu0 (!%p144_p9), %v2403_v60  ;;  %2347 = vmatprep.subr.bf16.mxu1 (!%p144_p9), %v2403_v60 }
  0x10   : > { %189 = vst.msk [vmem:[#allocation2 + $0x198] sm:$0xff] (!%p144_p9), %vm183_vm0, %v2470_v0  ;;  %190 = vst.msk [vmem:[#allocation2 + $0x1a0] sm:$0xff] (!%p144_p9), %vm183_vm0, %v2470_v0  ;;  %s2475_s6 = smov (!%p144_p9), 20   ;;  %s2476_s9 = smov (!%p144_p9), 24   ;;  %2310 = vmatpush3.bf16.msra.mxu0 (!%p144_p9), %v2403_v60  ;;  %2350 = vmatpush3.bf16.msra.mxu1 (!%p144_p9), %v2403_v60  ;;  %vm1475_vm3 = vcmask (!%p144_p9), 1041408   ;;  %vm1191_vm4 = vcmask (!%p144_p9), 64512  }
  0x11   : > { %194 = vst.msk [vmem:[#allocation2 + $0x18] sm:$0x1] (!%p144_p9), %vm192_vm2, %v2470_v0  ;;  %195 = vst.msk [vmem:[#allocation2 + $0x30] sm:$0x1] (!%p144_p9), %vm192_vm2, %v2470_v0  ;;  %2311 = vmatprep.subr.bf16.mxu0 (!%p144_p9), %v2404_v62  ;;  %s2477_s20 = smov (!%p144_p9), 28   ;;  %2348 = vmatprep.subr.bf16.mxu1 (!%p144_p9), %v2404_v62  ;;  %s2478_s26 = smov (!%p144_p9), 32  }
  0x12   : > { %196 = vst.msk [vmem:[#allocation2 + $0x48] sm:$0x1] (!%p144_p9), %vm192_vm2, %v2470_v0  ;;  %197 = vst.msk [vmem:[#allocation2 + $0x60] sm:$0x1] (!%p144_p9), %vm192_vm2, %v2470_v0  ;;  %vm1224_vm5 = vcmask (!%p144_p9), 97280   ;;  %vm1257_vm6 = vcmask (!%p144_p9), 130048  }
  0x13   : > { %198 = vst.msk [vmem:[#allocation2 + $0x78] sm:$0x1] (!%p144_p9), %vm192_vm2, %v2470_v0  ;;  %199 = vst.msk [vmem:[#allocation2 + $0x90] sm:$0x1] (!%p144_p9), %vm192_vm2, %v2470_v0  ;;  %vm1290_vm7 = vcmask (!%p144_p9), 162816   ;;  %vm1323_vm8 = vcmask (!%p144_p9), 195584  }
  0x14   : > { %200 = vst.msk [vmem:[#allocation2 + $0xa8] sm:$0x1] (!%p144_p9), %vm192_vm2, %v2470_v0  ;;  %201 = vst.msk [vmem:[#allocation2 + $0xc0] sm:$0x1] (!%p144_p9), %vm192_vm2, %v2470_v0  ;;  %2312 = vmatpush3.bf16.msra.mxu0 (!%p144_p9), %v2404_v62  ;;  %2351 = vmatpush3.bf16.msra.mxu1 (!%p144_p9), %v2404_v62  ;;  %vm1356_vm9 = vcmask (!%p144_p9), 228352   ;;  %vm1389_vm10 = vcmask (!%p144_p9), 261120  }
  0x15   : > { %202 = vst.msk [vmem:[#allocation2 + $0xd8] sm:$0x1] %vm192_vm2, %v2470_v0  ;;  %203 = vst.msk [vmem:[#allocation2 + $0xf0] sm:$0x1] %vm192_vm2, %v2470_v0  ;;  %s2590_s24 = scalar_select %p172_p10, %s2521_s16, 1  ;;  %v422_v4 = vld [vmem:[#allocation2 + $0x2] sm:$0xff] }
  0x16   : > { %204 = vst.msk [vmem:[#allocation2 + $0x108] sm:$0x1] %vm192_vm2, %v2470_v0  ;;  %205 = vst.msk [vmem:[#allocation2 + $0x120] sm:$0x1] %vm192_vm2, %v2470_v0  ;;  %v374_v5 = vld [vmem:[#allocation2 + $0x1] sm:$0xff]  ;;  %v375_v6 = vld [vmem:[#allocation2 + $0x9] sm:$0xff] }
  0x17   : > { %206 = vst.msk [vmem:[#allocation2 + $0x138] sm:$0x1] %vm192_vm2, %v2470_v0  ;;  %207 = vst.msk [vmem:[#allocation2 + $0x150] sm:$0x1] %vm192_vm2, %v2470_v0  ;;  %s2177_s25 = sshll.u32 %s2590_s24, 7  ;;  %v406_v12 = vpack.c.bf16 %v375_v6, %v374_v5  ;;  %vm1442_vm11 = vcmask 293888  }
  0x18   : > { %208 = vst.msk [vmem:[#allocation2 + $0x168] sm:$0x1] %vm192_vm2, %v2470_v0  ;;  %209 = vst.msk [vmem:[#allocation2 + $0x180] sm:$0x1] %vm192_vm2, %v2470_v0  ;;  %s2598_s28 = scalar_lea.vmem %s3420_s0, %s2177_s25  ;;  %vm1768_vm12 = vcmask 60416   ;;  %s169_s24 = sand.u32 1, %s2460_s13  }
  0x19   : > { %212 = vst.msk [vmem:[#allocation2 + $0x29] sm:$0x1] %vm192_vm2, %v2470_v0  ;;  %213 = vst.msk [vmem:[#allocation2 + $0x41] sm:$0x1] %vm192_vm2, %v2470_v0  ;;  %v2212_v1 = vld [vmem:[%s2598_s28] sm:$0xff]   ;;  %v2275_v2 = vld [vmem:[%s2598_s28 + $0x8] sm:$0xff]   ;;  %775 = vrot.lane.b32.xlu0 %v406_v12, %s2471_s29 }
  0x1a   : > { %214 = vst.msk [vmem:[#allocation2 + $0x59] sm:$0x1] %vm192_vm2, %v2470_v0  ;;  %215 = vst.msk [vmem:[#allocation2 + $0x71] sm:$0x1] %vm192_vm2, %v2470_v0  ;;  %v2276_v3 = vld [vmem:[%s2598_s28 + $0x10] sm:$0xff]   ;;  %v2213_v7 = vunpack.c.l.bf16 %v2212_v1  ;;  %v2214_v8 = vunpack.c.h.bf16 %v2212_v1  ;;  %v2217_v9 = vunpack.c.l.bf16 %v2275_v2  ;;  %v2218_v10 = vunpack.c.h.bf16 %v2275_v2  ;;  %v2277_v15 = vld [vmem:[%s2598_s28 + $0x18] sm:$0xff]  }
  0x1b   : > { %216 = vst.msk [vmem:[#allocation2 + $0x89] sm:$0x1] %vm192_vm2, %v2470_v0  ;;  %217 = vst.msk [vmem:[#allocation2 + $0xa1] sm:$0x1] %vm192_vm2, %v2470_v0  ;;  %v2221_v13 = vunpack.c.l.bf16 %v2276_v3  ;;  %v2222_v14 = vunpack.c.h.bf16 %v2276_v3  ;;  %v2278_v16 = vld [vmem:[%s2598_s28 + $0x20] sm:$0xff]   ;;  %v2225_v18 = vunpack.c.l.bf16 %v2277_v15  ;;  %v2226_v19 = vunpack.c.h.bf16 %v2277_v15  ;;  %v2279_v21 = vld [vmem:[%s2598_s28 + $0x28] sm:$0xff]  }
  0x1c   : > { %218 = vst.msk [vmem:[#allocation2 + $0xb9] sm:$0x1] %vm192_vm2, %v2470_v0  ;;  %219 = vst.msk [vmem:[#allocation2 + $0xd1] sm:$0x1] %vm192_vm2, %v2470_v0  ;;  %v2229_v20 = vunpack.c.l.bf16 %v2278_v16  ;;  %v2280_v22 = vld [vmem:[%s2598_s28 + $0x30] sm:$0xff]   ;;  %v2281_v23 = vld [vmem:[%s2598_s28 + $0x38] sm:$0xff]   ;;  %v2230_v24 = vunpack.c.h.bf16 %v2278_v16  ;;  %v2233_v25 = vunpack.c.l.bf16 %v2279_v21  ;;  %v2234_v26 = vunpack.c.h.bf16 %v2279_v21 }
  0x1d   : > { %220 = vst.msk [vmem:[#allocation2 + $0xe9] sm:$0x1] %vm192_vm2, %v2470_v0  ;;  %221 = vst.msk [vmem:[#allocation2 + $0x101] sm:$0x1] %vm192_vm2, %v2470_v0  ;;  %v2237_v27 = vunpack.c.l.bf16 %v2280_v22  ;;  %v2282_v28 = vld [vmem:[%s2598_s28 + $0x40] sm:$0xff]   ;;  %v2238_v29 = vunpack.c.h.bf16 %v2280_v22  ;;  %v2241_v30 = vunpack.c.l.bf16 %v2281_v23  ;;  %v2242_v31 = vunpack.c.h.bf16 %v2281_v23  ;;  %v2283_v32 = vld [vmem:[%s2598_s28 + $0x48] sm:$0xff]  }
  0x1e   : > { %222 = vst.msk [vmem:[#allocation2 + $0x119] sm:$0x1] %vm192_vm2, %v2470_v0  ;;  %223 = vst.msk [vmem:[#allocation2 + $0x131] sm:$0x1] %vm192_vm2, %v2470_v0  ;;  %v2245_v33 = vunpack.c.l.bf16 %v2282_v28  ;;  %v2246_v34 = vunpack.c.h.bf16 %v2282_v28  ;;  %v2249_v35 = vunpack.c.l.bf16 %v2283_v32  ;;  %v2250_v36 = vunpack.c.h.bf16 %v2283_v32  ;;  %v2284_v63 = vld [vmem:[%s2598_s28 + $0x50] sm:$0xff]   ;;  %v2285_v6 = vld [vmem:[%s2598_s28 + $0x58] sm:$0xff]  }
  0x1f   : > { %224 = vst.msk [vmem:[#allocation2 + $0x149] sm:$0x1] %vm192_vm2, %v2470_v0  ;;  %225 = vst.msk [vmem:[#allocation2 + $0x161] sm:$0x1] %vm192_vm2, %v2470_v0  ;;  %v2253_v1 = vunpack.c.l.bf16 %v2284_v63  ;;  %v2254_v2 = vunpack.c.h.bf16 %v2284_v63  ;;  %v2286_v16 = vld [vmem:[%s2598_s28 + $0x60] sm:$0xff]   ;;  %vm2004_vm13 = vcmask 57344  }
  0x20   : > { %226 = vst.msk [vmem:[#allocation2 + $0x179] sm:$0x1] %vm192_vm2, %v2470_v0  ;;  %227 = vst.msk [vmem:[#allocation2 + $0x191] sm:$0x1] %vm192_vm2, %v2470_v0 }
  0x21   : > { %211 = vst.msk [vmem:[#allocation2 + $0x11] sm:$0x1] %vm192_vm2, %v2470_v0  ;;  %228 = vst.msk [vmem:[#allocation2 + $0x1a9] sm:$0x1] %vm192_vm2, %v2470_v0 }
  0x22   : > { %193 = vst.msk [vmem:[#allocation2] sm:$0x1] %vm192_vm2, %v2470_v0  ;;  %210 = vst.msk [vmem:[#allocation2 + $0x198] sm:$0x1] %vm192_vm2, %v2470_v0 }
  0x23   : > { %294 = vst.msk [vmem:[#allocation2 + $0x19] sm:$0xff] %vm183_vm0, %v2213_v7  ;;  %295 = vst.msk [vmem:[#allocation2 + $0x21] sm:$0xff] %vm183_vm0, %v2214_v8  ;;  %v2405_v0 = vld [vmem:[%s3421_s1 + $0x10] ss:$0 sps:$4 sm:$0x33]   ;;  %v2257_v8 = vunpack.c.l.bf16 %v2285_v6 }
  0x24   : > { %296 = vst.msk [vmem:[#allocation2 + $0x31] sm:$0xff] %vm183_vm0, %v2217_v9  ;;  %297 = vst.msk [vmem:[#allocation2 + $0x39] sm:$0xff] %vm183_vm0, %v2218_v10  ;;  %2353 = vmatprep.subr.msk.bf16.mxu0 %vm1475_vm3, %v2405_v0  ;;  %v1477_v5 = vsel %vm1475_vm3, %v2405_v0, 0  ;;  %2354 = vmatprep.subr.msk.bf16.mxu1 %vm1475_vm3, %v2405_v0  ;;  %v2258_v9 = vunpack.c.h.bf16 %v2285_v6 }
  0x25   : > { %298 = vst.msk [vmem:[#allocation2 + $0x49] sm:$0xff] %vm183_vm0, %v2221_v13  ;;  %299 = vst.msk [vmem:[#allocation2 + $0x51] sm:$0xff] %vm183_vm0, %v2222_v14  ;;  %2314 = vmatpush3.bf16.msra.mxu0 %v1477_v5  ;;  %2352 = vmatpush3.bf16.msra.mxu1 %v1477_v5 }
  0x26   : > { %300 = vst.msk [vmem:[#allocation2 + $0x61] sm:$0xff] %vm183_vm0, %v2225_v18  ;;  %301 = vst.msk [vmem:[#allocation2 + $0x69] sm:$0xff] %vm183_vm0, %v2226_v19  ;;  %v2261_v19 = vunpack.c.l.bf16 %v2286_v16 }
  0x27   : > { %302 = vst.msk [vmem:[#allocation2 + $0x79] sm:$0xff] %vm183_vm0, %v2229_v20  ;;  %303 = vst.msk [vmem:[#allocation2 + $0x81] sm:$0xff] %vm183_vm0, %v2230_v24  ;;  %v2262_v20 = vunpack.c.h.bf16 %v2286_v16 }
  0x28   : > { %v423_v11 = vld [vmem:[#allocation2 + $0xa] sm:$0xff]  ;;  %304 = vst.msk [vmem:[#allocation2 + $0x91] sm:$0xff] %vm183_vm0, %v2233_v25  ;;  %305 = vst.msk [vmem:[#allocation2 + $0x99] sm:$0xff] %vm183_vm0, %v2234_v26 }
  0x29   : > { %v454_v17 = vpack.c.bf16 %v423_v11, %v422_v4  ;;  %306 = vst.msk [vmem:[#allocation2 + $0xa9] sm:$0xff] %vm183_vm0, %v2237_v27  ;;  %307 = vst.msk [vmem:[#allocation2 + $0xb1] sm:$0xff] %vm183_vm0, %v2238_v29 }
  0x2a   : > { %308 = vst.msk [vmem:[#allocation2 + $0xc1] sm:$0xff] %vm183_vm0, %v2241_v30  ;;  %309 = vst.msk [vmem:[#allocation2 + $0xc9] sm:$0xff] %vm183_vm0, %v2242_v31  ;;  %v424_v37 = vld [vmem:[#allocation2 + $0x1a] sm:$0xff]  ;;  %v425_v38 = vld [vmem:[#allocation2 + $0x22] sm:$0xff] }
  0x2b   : > { %823 = vrot.lane.b32.xlu1 %v454_v17, %s2472_s30  ;;  %310 = vst.msk [vmem:[#allocation2 + $0xd9] sm:$0xff] %vm183_vm0, %v2245_v33  ;;  %311 = vst.msk [vmem:[#allocation2 + $0xe1] sm:$0xff] %vm183_vm0, %v2246_v34  ;;  %v376_v39 = vld [vmem:[#allocation2 + $0x19] sm:$0xff]  ;;  %v455_v40 = vpack.c.bf16 %v425_v38, %v424_v37  ;;  %v377_v41 = vld [vmem:[#allocation2 + $0x21] sm:$0xff] }
  0x2c   : > { %312 = vst.msk [vmem:[#allocation2 + $0xf1] sm:$0xff] %vm183_vm0, %v2249_v35  ;;  %313 = vst.msk [vmem:[#allocation2 + $0xf9] sm:$0xff] %vm183_vm0, %v2250_v36  ;;  %v472_v42 = vld [vmem:[#allocation2 + $0x30] sm:$0xff]  ;;  %v473_v43 = vld [vmem:[#allocation2 + $0x38] sm:$0xff]  ;;  %v407_v44 = vpack.c.bf16 %v377_v41, %v376_v39 }
  0x2d   : > { %v470_v45 = vld [vmem:[#allocation2 + $0x18] sm:$0xff]  ;;  %v471_v46 = vld [vmem:[#allocation2 + $0x20] sm:$0xff]  ;;  %v2633_v47 = vpack.c.bf16 %v473_v43, %v472_v42  ;;  %v617_v55 = vld [vmem:[#allocation2 + $0x48] sm:$0xff]  ;;  %314 = vst.msk [vmem:[#allocation2 + $0x109] sm:$0xff] %vm183_vm0, %v2253_v1 }
  0x2e   : > { %777 = vrot.lane.b32.xlu0 %v407_v44, %s2471_s29  ;;  %v2636_v48 = vpack.c.bf16 %v471_v46, %v470_v45  ;;  %v520_v49 = vld [vmem:[#allocation2 + $0x31] sm:$0xff]  ;;  %v521_v50 = vld [vmem:[#allocation2 + $0x39] sm:$0xff]  ;;  %v665_v58 = vld [vmem:[#allocation2 + $0x49] sm:$0xff]  ;;  %315 = vst.msk [vmem:[#allocation2 + $0x111] sm:$0xff] %vm183_vm0, %v2254_v2 }
  0x2f   : > { %825 = vrot.lane.b32.xlu1 %v455_v40, %s2472_s30  ;;  %v551_v51 = vpack.c.bf16 %v521_v50, %v520_v49  ;;  %v568_v52 = vld [vmem:[#allocation2 + $0x32] sm:$0xff]  ;;  %v569_v53 = vld [vmem:[#allocation2 + $0x3a] sm:$0xff]  ;;  %v713_v3 = vld [vmem:[#allocation2 + $0x4a] sm:$0xff]  ;;  %316 = vst.msk [vmem:[#allocation2 + $0x121] sm:$0xff] %vm183_vm0, %v2257_v8 }
  0x30   : > { %v599_v54 = vpack.c.bf16 %v569_v53, %v568_v52  ;;  %v618_v56 = vld [vmem:[#allocation2 + $0x50] sm:$0xff]  ;;  %317 = vst.msk [vmem:[#allocation2 + $0x129] sm:$0xff] %vm183_vm0, %v2258_v9  ;;  %v476_v10 = vld [vmem:[#allocation2 + $0x60] sm:$0xff]  ;;  %v477_v11 = vld [vmem:[#allocation2 + $0x68] sm:$0xff] }
  0x31   : > { %v2645_v57 = vpack.c.bf16 %v618_v56, %v617_v55  ;;  %v666_v59 = vld [vmem:[#allocation2 + $0x51] sm:$0xff]  ;;  %v2674_v12 = vpack.c.bf16 %v477_v11, %v476_v10  ;;  %v524_v13 = vld [vmem:[#allocation2 + $0x61] sm:$0xff]  ;;  %v525_v14 = vld [vmem:[#allocation2 + $0x69] sm:$0xff]  ;;  %318 = vst.msk [vmem:[#allocation2 + $0x139] sm:$0xff] %vm183_vm0, %v2261_v19 }
  0x32   : > { %871 = vrot.lane.b32.xlu0 %v2636_v48, %s2473_s4  ;;  %v696_v61 = vpack.c.bf16 %v666_v59, %v665_v58  ;;  %v714_v4 = vld [vmem:[#allocation2 + $0x52] sm:$0xff]  ;;  %v553_v15 = vpack.c.bf16 %v525_v14, %v524_v13  ;;  %v572_v17 = vld [vmem:[#allocation2 + $0x62] sm:$0xff]  ;;  %v573_v18 = vld [vmem:[#allocation2 + $0x6a] sm:$0xff]  ;;  %319 = vst.msk [vmem:[#allocation2 + $0x141] sm:$0xff] %vm183_vm0, %v2262_v20 }
  0x33   : > { %873 = vrot.lane.b32.xlu1 %v2633_v47, %s2473_s4  ;;  %v744_v7 = vpack.c.bf16 %v714_v4, %v713_v3  ;;  %v601_v21 = vpack.c.bf16 %v573_v18, %v572_v17  ;;  %v621_v22 = vld [vmem:[#allocation2 + $0x78] sm:$0xff]  ;;  %v622_v23 = vld [vmem:[#allocation2 + $0x80] sm:$0xff]  ;;  %v2287_v30 = vld [vmem:[%s2598_s28 + $0x68] sm:$0xff]  }
  0x34   : > { %v2687_v24 = vpack.c.bf16 %v622_v23, %v621_v22  ;;  %v669_v25 = vld [vmem:[#allocation2 + $0x79] sm:$0xff]  ;;  %v670_v26 = vld [vmem:[#allocation2 + $0x81] sm:$0xff]  ;;  %v2265_v32 = vunpack.c.l.bf16 %v2287_v30  ;;  %v2266_v33 = vunpack.c.h.bf16 %v2287_v30  ;;  %v480_v34 = vld [vmem:[#allocation2 + $0x90] sm:$0xff] }
  0x35   : > { %v698_v27 = vpack.c.bf16 %v670_v26, %v669_v25  ;;  %v717_v28 = vld [vmem:[#allocation2 + $0x7a] sm:$0xff]  ;;  %v718_v29 = vld [vmem:[#allocation2 + $0x82] sm:$0xff]  ;;  %v528_v37 = vld [vmem:[#allocation2 + $0x91] sm:$0xff] }
  0x36   : > { %919 = vrot.lane.b32.xlu0 %v407_v44, %s2474_s5  ;;  %v746_v31 = vpack.c.bf16 %v718_v29, %v717_v28  ;;  %320 = vst.msk [vmem:[#allocation2 + $0x151] sm:$0xff] %vm183_vm0, %v2265_v32  ;;  %321 = vst.msk [vmem:[#allocation2 + $0x159] sm:$0xff] %vm183_vm0, %v2266_v33  ;;  %v481_v35 = vld [vmem:[#allocation2 + $0x98] sm:$0xff]  ;;  %v625_v46 = vld [vmem:[#allocation2 + $0xa8] sm:$0xff] }
  0x37   : > { %921 = vrot.lane.b32.xlu1 %v551_v51, %s2474_s5  ;;  %v2704_v36 = vpack.c.bf16 %v481_v35, %v480_v34  ;;  %v529_v38 = vld [vmem:[#allocation2 + $0x99] sm:$0xff]  ;;  %v626_v49 = vld [vmem:[#allocation2 + $0xb0] sm:$0xff]  ;;  %v485_v62 = vld [vmem:[#allocation2 + $0xc8] sm:$0xff] }
  0x38   : > { %v555_v39 = vpack.c.bf16 %v529_v38, %v528_v37  ;;  %v576_v41 = vld [vmem:[#allocation2 + $0x92] sm:$0xff]  ;;  %v577_v42 = vld [vmem:[#allocation2 + $0x9a] sm:$0xff]  ;;  %v2717_v50 = vpack.c.bf16 %v626_v49, %v625_v46  ;;  %v533_v1 = vld [vmem:[#allocation2 + $0xc9] sm:$0xff] }
  0x39   : > { %v603_v45 = vpack.c.bf16 %v577_v42, %v576_v41  ;;  %v674_v52 = vld [vmem:[#allocation2 + $0xb1] sm:$0xff]  ;;  %v532_v0 = vld [vmem:[#allocation2 + $0xc1] sm:$0xff]  ;;  %v677_v11 = vld [vmem:[#allocation2 + $0xd9] sm:$0xff] }
  0x3a   : > { %967 = vrot.lane.b32.xlu0 %v455_v40, %s2475_s6  ;;  %v2288_v40 = vld [vmem:[%s2598_s28 + $0x70] sm:$0xff]   ;;  %v2289_v56 = vld [vmem:[%s2598_s28 + $0x78] sm:$0xff]   ;;  %v557_v2 = vpack.c.bf16 %v533_v1, %v532_v0  ;;  %v580_v3 = vld [vmem:[#allocation2 + $0xc2] sm:$0xff] }
  0x3b   : > { %969 = vrot.lane.b32.xlu1 %v599_v54, %s2475_s6  ;;  %v2269_v43 = vunpack.c.l.bf16 %v2288_v40  ;;  %v2270_v44 = vunpack.c.h.bf16 %v2288_v40  ;;  %v722_v55 = vld [vmem:[#allocation2 + $0xb2] sm:$0xff]  ;;  %v2273_v59 = vunpack.c.l.bf16 %v2289_v56  ;;  %v2274_v60 = vunpack.c.h.bf16 %v2289_v56  ;;  %v581_v4 = vld [vmem:[#allocation2 + $0xca] sm:$0xff]  ;;  %v678_v13 = vld [vmem:[#allocation2 + $0xe1] sm:$0xff] }
  0x3c   : > { %v605_v5 = vpack.c.bf16 %v581_v4, %v580_v3  ;;  %v629_v6 = vld [vmem:[#allocation2 + $0xd8] sm:$0xff]  ;;  %v702_v14 = vpack.c.bf16 %v678_v13, %v677_v11  ;;  %v726_v19 = vld [vmem:[#allocation2 + $0xe2] sm:$0xff] }
  0x3d   : > { %322 = vst.msk [vmem:[#allocation2 + $0x169] sm:$0xff] %vm183_vm0, %v2269_v43  ;;  %323 = vst.msk [vmem:[#allocation2 + $0x171] sm:$0xff] %vm183_vm0, %v2270_v44  ;;  %v725_v18 = vld [vmem:[#allocation2 + $0xda] sm:$0xff]  ;;  %v327_v25 = vld [vmem:[#allocation2 + $0x8] sm:$0xff] }
  0x3e   : > { %1015 = vrot.lane.b32.xlu0 %v2633_v47, %s2476_s9  ;;  %324 = vst.msk [vmem:[#allocation2 + $0x181] sm:$0xff] %vm183_vm0, %v2273_v59  ;;  %325 = vst.msk [vmem:[#allocation2 + $0x189] sm:$0xff] %vm183_vm0, %v2274_v60  ;;  %v326_v26 = vld [vmem:[#allocation2] sm:$0xff]  ;;  %v489_v28 = vld [vmem:[#allocation2 + $0xf8] sm:$0xff] }
  0x3f   : > { %1017 = vrot.lane.b32.xlu1 %v2645_v57, %s2476_s9  ;;  %v358_v30 = vpack.c.bf16 %v327_v25, %v326_v26  ;;  %v536_v33 = vld [vmem:[#allocation2 + $0xf1] sm:$0xff]  ;;  %v537_v34 = vld [vmem:[#allocation2 + $0xf9] sm:$0xff] }
  0x40   : > { %v584_v40 = vld [vmem:[#allocation2 + $0xf2] sm:$0xff]  ;;  %v585_v41 = vld [vmem:[#allocation2 + $0xfa] sm:$0xff] }
  0x41   : > { %v682_v3 = vld [vmem:[#allocation2 + $0x111] sm:$0xff] }
  0x42   : > { %1063 = vrot.lane.b32.xlu0 %v551_v51, %s2477_s20 }
  0x43   : > { %1065 = vrot.lane.b32.xlu1 %v696_v61, %s2477_s20 }
  0x46   : > { %1111 = vrot.lane.b32.xlu0 %v599_v54, %s2478_s26 }
  0x47   : > { %779 = vrot.lane.b32.xlu1 %v551_v51, %s2471_s29  ;;  %v673_v51 = vld [vmem:[#allocation2 + $0xa9] sm:$0xff] }
  0x48   : > { %v700_v53 = vpack.c.bf16 %v674_v52, %v673_v51  ;;  %v607_v51 = vpack.c.bf16 %v585_v41, %v584_v40 }
  0x4a   : > { %1113 = vrot.lane.b32.xlu0 %v744_v7, %s2478_s26 }
  0x4b   : > { %781 = vrot.lane.b32.xlu1 %v696_v61, %s2471_s29 }
  0x4e   : > { %827 = vrot.lane.b32.xlu0 %v599_v54, %s2472_s30  ;;  %v721_v54 = vld [vmem:[#allocation2 + $0xaa] sm:$0xff] }
  0x4f   : > { %829 = vrot.lane.b32.xlu1 %v744_v7, %s2472_s30  ;;  %v748_v58 = vpack.c.bf16 %v722_v55, %v721_v54  ;;  %v634_v54 = vld [vmem:[#allocation2 + $0x110] sm:$0xff] }
  0x52   : > { %875 = vrot.lane.b32.xlu0 %v2645_v57, %s2473_s4 }
  0x53   : > { %877 = vrot.lane.b32.xlu1 %v2674_v12, %s2473_s4 }
  0x56   : > { %923 = vrot.lane.b32.xlu0 %v696_v61, %s2474_s5  ;;  %v484_v61 = vld [vmem:[#allocation2 + $0xc0] sm:$0xff] }
  0x57   : > { %925 = vrot.lane.b32.xlu1 %v553_v15, %s2474_s5  ;;  %v2734_v63 = vpack.c.bf16 %v485_v62, %v484_v61 }
  0x5a   : > { %971 = vrot.lane.b32.xlu0 %v744_v7, %s2475_s6  ;;  %v630_v7 = vld [vmem:[#allocation2 + $0xe0] sm:$0xff] }
  0x5b   : > { %973 = vrot.lane.b32.xlu1 %v601_v21, %s2475_s6  ;;  %v2744_v9 = vpack.c.bf16 %v630_v7, %v629_v6 }
  0x5e   : > { %1019 = vrot.lane.b32.xlu0 %v2674_v12, %s2476_s9 }
  0x5f   : > { %1021 = vrot.lane.b32.xlu1 %v2687_v24, %s2476_s9 }
  0x62   : > { %1067 = vrot.lane.b32.xlu0 %v553_v15, %s2477_s20 }
  0x63   : > { %1069 = vrot.lane.b32.xlu1 %v698_v27, %s2477_s20 }
  0x66   : > { %1115 = vrot.lane.b32.xlu0 %v601_v21, %s2478_s26 }
  0x67   : > { %783 = vrot.lane.b32.xlu1 %v553_v15, %s2471_s29 }
  0x6a   : > { %1117 = vrot.lane.b32.xlu0 %v746_v31, %s2478_s26 }
  0x6b   : > { %785 = vrot.lane.b32.xlu1 %v698_v27, %s2471_s29 }
  0x6e   : > { %831 = vrot.lane.b32.xlu0 %v601_v21, %s2472_s30  ;;  %v750_v21 = vpack.c.bf16 %v726_v19, %v725_v18 }
  0x6f   : > { %833 = vrot.lane.b32.xlu1 %v746_v31, %s2472_s30 }
  0x72   : > { %879 = vrot.lane.b32.xlu0 %v2687_v24, %s2473_s4 }
  0x73   : > { %881 = vrot.lane.b32.xlu1 %v2704_v36, %s2473_s4 }
  0x76   : > { %927 = vrot.lane.b32.xlu0 %v698_v27, %s2474_s5  ;;  %v488_v27 = vld [vmem:[#allocation2 + $0xf0] sm:$0xff] }
  0x77   : > { %929 = vrot.lane.b32.xlu1 %v555_v39, %s2474_s5  ;;  %v2758_v32 = vpack.c.bf16 %v489_v28, %v488_v27  ;;  %v540_v27 = vld [vmem:[#allocation2 + $0x121] sm:$0xff]  ;;  %v541_v28 = vld [vmem:[#allocation2 + $0x129] sm:$0xff] }
  0x7a   : > { %975 = vrot.lane.b32.xlu0 %v746_v31, %s2475_s6 }
  0x7b   : > { %977 = vrot.lane.b32.xlu1 %v603_v45, %s2475_s6 }
  0x7e   : > { %1023 = vrot.lane.b32.xlu0 %v2704_v36, %s2476_s9 }
  0x7f   : > { %1025 = vrot.lane.b32.xlu1 %v2717_v50, %s2476_s9 }
  0x82   : > { %1071 = vrot.lane.b32.xlu0 %v555_v39, %s2477_s20 }
  0x83   : > { %1073 = vrot.lane.b32.xlu1 %v700_v53, %s2477_s20 }
  0x86   : > { %1119 = vrot.lane.b32.xlu0 %v603_v45, %s2478_s26 }
  0x87   : > { %787 = vrot.lane.b32.xlu1 %v555_v39, %s2471_s29  ;;  %v559_v39 = vpack.c.bf16 %v537_v34, %v536_v33  ;;  %v588_v34 = vld [vmem:[#allocation2 + $0x122] sm:$0xff] }
  0x8a   : > { %1121 = vrot.lane.b32.xlu0 %v748_v58, %s2478_s26 }
  0x8b   : > { %789 = vrot.lane.b32.xlu1 %v700_v53, %s2471_s29  ;;  %v776_v10 = vpop.permute.xlu0 %775 }
  0x8c   : > { %v1145_v37 = vsel %vm183_vm0, %v358_v30, %v776_v10 }
  0x8e   : > { %835 = vrot.lane.b32.xlu0 %v603_v45, %s2472_s30 }
  0x8f   : > { %837 = vrot.lane.b32.xlu1 %v748_v58, %s2472_s30 }
  0x92   : > { %883 = vrot.lane.b32.xlu0 %v2717_v50, %s2473_s4 }
  0x93   : > { %885 = vrot.lane.b32.xlu1 %v2734_v63, %s2473_s4 }
  0x96   : > { %931 = vrot.lane.b32.xlu0 %v700_v53, %s2474_s5  ;;  %v633_v53 = vld [vmem:[#allocation2 + $0x108] sm:$0xff] }
  0x97   : > { %933 = vrot.lane.b32.xlu1 %v557_v2, %s2474_s5  ;;  %v2781_v0 = vpack.c.bf16 %v634_v54, %v633_v53 }
  0x9a   : > { %979 = vrot.lane.b32.xlu0 %v748_v58, %s2475_s6 }
  0x9b   : > { %981 = vrot.lane.b32.xlu1 %v605_v5, %s2475_s6 }
  0x9d   : > { %v824_v8 = vpop.permute.xlu1 %823 }
  0x9e   : > { %1027 = vrot.lane.b32.xlu0 %v2734_v63, %s2476_s9  ;;  %v1193_v42 = vsel %vm1191_vm4, %v1145_v37, %v824_v8 }
  0x9f   : > { %1029 = vrot.lane.b32.xlu1 %v2744_v9, %s2476_s9 }
  0xa0   : > { %v778_v16 = vpop.permute.xlu0 %777 }
  0xa1   : > { %v826_v15 = vpop.permute.xlu1 %825  ;;  %v1148_v44 = vsel %vm183_vm0, %v2636_v48, %v778_v16  ;;  %v730_v16 = vld [vmem:[#allocation2 + $0x112] sm:$0xff] }
  0xa2   : > { %1075 = vrot.lane.b32.xlu0 %v557_v2, %s2477_s20  ;;  %v1195_v55 = vsel %vm1191_vm4, %v1148_v44, %v826_v15  ;;  %v729_v15 = vld [vmem:[#allocation2 + $0x10a] sm:$0xff]  ;;  %v637_v44 = vld [vmem:[#allocation2 + $0x138] sm:$0xff] }
  0xa3   : > { %1077 = vrot.lane.b32.xlu1 %v702_v14, %s2477_s20  ;;  %v752_v18 = vpack.c.bf16 %v730_v16, %v729_v15  ;;  %v496_v15 = vld [vmem:[#allocation2 + $0x150] sm:$0xff]  ;;  %v497_v16 = vld [vmem:[#allocation2 + $0x158] sm:$0xff] }
  0xa4   : > { %v872_v20 = vpop.permute.xlu0 %871 }
  0xa5   : > { %v874_v17 = vpop.permute.xlu1 %873  ;;  %v1226_v45 = vsel %vm1224_vm5, %v1193_v42, %v872_v20 }
  0xa6   : > { %1123 = vrot.lane.b32.xlu0 %v605_v5, %s2478_s26  ;;  %v1228_v58 = vsel %vm1224_vm5, %v1195_v55, %v874_v17 }
  0xa7   : > { %791 = vrot.lane.b32.xlu1 %v557_v2, %s2471_s29  ;;  %v681_v2 = vld [vmem:[#allocation2 + $0x109] sm:$0xff] }
  0xa8   : > { %v920_v23 = vpop.permute.xlu0 %919  ;;  %v704_v10 = vpack.c.bf16 %v682_v3, %v681_v2 }
  0xa9   : > { %v922_v22 = vpop.permute.xlu1 %921  ;;  %v1259_v49 = vsel %vm1257_vm6, %v1226_v45, %v920_v23  ;;  %v638_v45 = vld [vmem:[#allocation2 + $0x140] sm:$0xff] }
  0xaa   : > { %1125 = vrot.lane.b32.xlu0 %v750_v21, %s2478_s26  ;;  %v1261_v61 = vsel %vm1257_vm6, %v1228_v58, %v922_v22  ;;  %v493_v22 = vld [vmem:[#allocation2 + $0x128] sm:$0xff]  ;;  %v685_v58 = vld [vmem:[#allocation2 + $0x139] sm:$0xff] }
  0xab   : > { %793 = vrot.lane.b32.xlu1 %v702_v14, %s2471_s29 }
  0xac   : > { %v968_v31 = vpop.permute.xlu0 %967 }
  0xad   : > { %v970_v29 = vpop.permute.xlu1 %969  ;;  %v1292_v52 = vsel %vm1290_vm7, %v1259_v49, %v968_v31  ;;  %v561_v31 = vpack.c.bf16 %v541_v28, %v540_v27  ;;  %v592_v28 = vld [vmem:[#allocation2 + $0x152] sm:$0xff] }
  0xae   : > { %839 = vrot.lane.b32.xlu0 %v605_v5, %s2472_s30  ;;  %v1294_v1 = vsel %vm1290_vm7, %v1261_v61, %v970_v29 }
  0xaf   : > { %841 = vrot.lane.b32.xlu1 %v750_v21, %s2472_s30 }
  0xb0   : > { %v1016_v38 = vpop.permute.xlu0 %1015 }
  0xb1   : > { %v1018_v35 = vpop.permute.xlu1 %1017  ;;  %v1325_v48 = vsel %vm1323_vm8, %v1292_v52, %v1016_v38 }
  0xb2   : > { %887 = vrot.lane.b32.xlu0 %v2744_v9, %s2473_s4  ;;  %v1327_v4 = vsel %vm1323_vm8, %v1294_v1, %v1018_v35  ;;  %v589_v35 = vld [vmem:[#allocation2 + $0x12a] sm:$0xff] }
  0xb3   : > { %889 = vrot.lane.b32.xlu1 %v2758_v32, %s2473_s4  ;;  %v609_v42 = vpack.c.bf16 %v589_v35, %v588_v34 }
  0xb4   : > { %v1064_v46 = vpop.permute.xlu0 %1063 }
  0xb5   : > { %v1066_v43 = vpop.permute.xlu1 %1065  ;;  %v1358_v59 = vsel %vm1356_vm9, %v1325_v48, %v1064_v46  ;;  %v2825_v48 = vpack.c.bf16 %v638_v45, %v637_v44 }
  0xb6   : > { %935 = vrot.lane.b32.xlu0 %v702_v14, %s2474_s5  ;;  %v1360_v6 = vsel %vm1356_vm9, %v1327_v4, %v1066_v43 }
  0xb7   : > { %937 = vrot.lane.b32.xlu1 %v559_v39, %s2474_s5 }
  0xb8   : > { %v1112_v60 = vpop.permute.xlu0 %1111 }
  0xb9   : > { %v780_v56 = vpop.permute.xlu1 %779  ;;  %v1391_v62 = vsel %vm1389_vm10, %v1358_v59, %v1112_v60  ;;  %v686_v59 = vld [vmem:[#allocation2 + $0x141] sm:$0xff] }
  0xba   : > { %983 = vrot.lane.b32.xlu0 %v750_v21, %s2475_s6  ;;  %2315 = vmatprep.mubr.msk.bf16.mxu0 %vm1442_vm11, %v1391_v62  ;;  %v492_v21 = vld [vmem:[#allocation2 + $0x120] sm:$0xff]  ;;  %v1151_v33 = vsel %vm183_vm0, %v2633_v47, %v780_v56  ;;  %v706_v3 = vpack.c.bf16 %v686_v59, %v685_v58 }
  0xbb   : > { %985 = vrot.lane.b32.xlu1 %v607_v51, %s2475_s6  ;;  %v2801_v26 = vpack.c.bf16 %v493_v22, %v492_v21  ;;  %v545_v21 = vld [vmem:[#allocation2 + $0x159] sm:$0xff] }
  0xbc   : > { %v1114_v7 = vpop.permute.xlu0 %1113 }
  0xbd   : > { %v782_v5 = vpop.permute.xlu1 %781  ;;  %v1393_v8 = vsel %vm1389_vm10, %v1360_v6, %v1114_v7  ;;  %v733_v7 = vld [vmem:[#allocation2 + $0x13a] sm:$0xff] }
  0xbe   : > { %1031 = vrot.lane.b32.xlu0 %v2758_v32, %s2476_s9  ;;  %2316 = vmatmul.mubr.msk.bf16.vlgmr.msra.gmra.mrb[0].mxu0 %vm1442_vm11, %v1393_v8  ;;  %v1154_v43 = vsel %vm183_vm0, %v2645_v57, %v782_v5  ;;  %v734_v8 = vld [vmem:[#allocation2 + $0x142] sm:$0xff] }
  0xbf   : > { %1033 = vrot.lane.b32.xlu1 %v2781_v0, %s2476_s9 }
  0xc0   : > { %v828_v13 = vpop.permute.xlu0 %827 }
  0xc1   : > { %v830_v11 = vpop.permute.xlu1 %829  ;;  %v1197_v37 = vsel %vm1191_vm4, %v1151_v33, %v828_v13 }
  0xc2   : > { %1079 = vrot.lane.b32.xlu0 %v559_v39, %s2477_s20  ;;  %v1199_v46 = vsel %vm1191_vm4, %v1154_v43, %v830_v11  ;;  %v754_v11 = vpack.c.bf16 %v734_v8, %v733_v7  ;;  %v500_v7 = vld [vmem:[#allocation2 + $0x180] sm:$0xff]  ;;  %v501_v8 = vld [vmem:[#allocation2 + $0x188] sm:$0xff] }
  0xc3   : > { %1081 = vrot.lane.b32.xlu1 %v704_v10, %s2477_s20 }
  0xc4   : > { %v876_v17 = vpop.permute.xlu0 %875 }
  0xc5   : > { %v878_v14 = vpop.permute.xlu1 %877 }
  0xc6   : > { %1127 = vrot.lane.b32.xlu0 %v607_v51, %s2478_s26  ;;  %v1232_v52 = vsel %vm1224_vm5, %v1199_v46, %v878_v14 }
  0xc7   : > { %795 = vrot.lane.b32.xlu1 %v559_v39, %s2471_s29  ;;  %v1230_v39 = vsel %vm1224_vm5, %v1197_v37, %v876_v17 }
  0xc8   : > { %v924_v20 = vpop.permute.xlu0 %923 }
  0xc9   : > { %v926_v19 = vpop.permute.xlu1 %925  ;;  %v1263_v41 = vsel %vm1257_vm6, %v1230_v39, %v924_v20  ;;  %v544_v20 = vld [vmem:[#allocation2 + $0x151] sm:$0xff]  ;;  %v641_v39 = vld [vmem:[#allocation2 + $0x168] sm:$0xff] }
  0xca   : > { %1129 = vrot.lane.b32.xlu0 %v752_v18, %s2478_s26  ;;  %v1265_v55 = vsel %vm1257_vm6, %v1232_v52, %v926_v19  ;;  %v2845_v19 = vpack.c.bf16 %v497_v16, %v496_v15  ;;  %v689_v52 = vld [vmem:[#allocation2 + $0x169] sm:$0xff] }
  0xcb   : > { %797 = vrot.lane.b32.xlu1 %v704_v10, %s2471_s29  ;;  %v549_v15 = vld [vmem:[#allocation2 + $0x189] sm:$0xff] }
  0xcc   : > { %v972_v25 = vpop.permute.xlu0 %971 }
  0xcd   : > { %v974_v23 = vpop.permute.xlu1 %973  ;;  %v1296_v47 = vsel %vm1290_vm7, %v1263_v41, %v972_v25  ;;  %v563_v25 = vpack.c.bf16 %v545_v21, %v544_v20  ;;  %v596_v21 = vld [vmem:[#allocation2 + $0x182] sm:$0xff] }
  0xce   : > { %843 = vrot.lane.b32.xlu0 %v607_v51, %s2472_s30  ;;  %v1298_v56 = vsel %vm1290_vm7, %v1265_v55, %v974_v23 }
  0xcf   : > { %845 = vrot.lane.b32.xlu1 %v752_v18, %s2472_s30 }
  0xd0   : > { %v1020_v30 = vpop.permute.xlu0 %1019 }
  0xd1   : > { %v1022_v29 = vpop.permute.xlu1 %1021  ;;  %v1329_v49 = vsel %vm1323_vm8, %v1296_v47, %v1020_v30 }
  0xd2   : > { %891 = vrot.lane.b32.xlu0 %v2781_v0, %s2473_s4  ;;  %v1331_v60 = vsel %vm1323_vm8, %v1298_v56, %v1022_v29  ;;  %v593_v29 = vld [vmem:[#allocation2 + $0x15a] sm:$0xff] }
  0xd3   : > { %893 = vrot.lane.b32.xlu1 %v2801_v26, %s2473_s4  ;;  %v611_v37 = vpack.c.bf16 %v593_v29, %v592_v28 }
  0xd4   : > { %v1068_v40 = vpop.permute.xlu0 %1067 }
  0xd5   : > { %v1070_v38 = vpop.permute.xlu1 %1069  ;;  %v1362_v53 = vsel %vm1356_vm9, %v1329_v49, %v1068_v40  ;;  %v642_v40 = vld [vmem:[#allocation2 + $0x170] sm:$0xff] }
  0xd6   : > { %939 = vrot.lane.b32.xlu0 %v704_v10, %s2474_s5  ;;  %v1364_v62 = vsel %vm1356_vm9, %v1331_v60, %v1070_v38  ;;  %v2869_v49 = vpack.c.bf16 %v642_v40, %v641_v39 }
  0xd7   : > { %941 = vrot.lane.b32.xlu1 %v561_v31, %s2474_s5 }
  0xd8   : > { %v1116_v54 = vpop.permute.xlu0 %1115 }
  0xd9   : > { %v784_v51 = vpop.permute.xlu1 %783  ;;  %v1395_v57 = vsel %vm1389_vm10, %v1362_v53, %v1116_v54  ;;  %v690_v53 = vld [vmem:[#allocation2 + $0x171] sm:$0xff] }
  0xda   : > { %987 = vrot.lane.b32.xlu0 %v752_v18, %s2475_s6  ;;  %2319 = vmatprep.mubr.msk.bf16.mxu0 %vm1442_vm11, %v1395_v57  ;;  %v1157_v27 = vsel %vm183_vm0, %v2674_v12, %v784_v51  ;;  %v708_v59 = vpack.c.bf16 %v690_v53, %v689_v52 }
  0xdb   : > { %989 = vrot.lane.b32.xlu1 %v609_v42, %s2475_s6 }
  0xdc   : > { %v1118_v1 = vpop.permute.xlu0 %1117 }
  0xdd   : > { %v786_v61 = vpop.permute.xlu1 %785  ;;  %v1397_v2 = vsel %vm1389_vm10, %v1364_v62, %v1118_v1  ;;  %v737_v1 = vld [vmem:[#allocation2 + $0x16a] sm:$0xff] }
  0xde   : > { %1035 = vrot.lane.b32.xlu0 %v2801_v26, %s2476_s9  ;;  %2320 = vmatmul.mubr.msk.bf16.gmra.mrb[4].mxu0 %vm1442_vm11, %v1397_v2  ;;  %v1160_v38 = vsel %vm183_vm0, %v2687_v24, %v786_v61  ;;  %v738_v2 = vld [vmem:[#allocation2 + $0x172] sm:$0xff] }
  0xdf   : > { %1037 = vrot.lane.b32.xlu1 %v2825_v48, %s2476_s9 }
  0xe0   : > { %v832_v5 = vpop.permute.xlu0 %831 }
  0xe1   : > { %v834_v4 = vpop.permute.xlu1 %833  ;;  %v1201_v30 = vsel %vm1191_vm4, %v1157_v27, %v832_v5 }
  0xe2   : > { %1083 = vrot.lane.b32.xlu0 %v561_v31, %s2477_s20  ;;  %v1203_v41 = vsel %vm1191_vm4, %v1160_v38, %v834_v4  ;;  %v756_v4 = vpack.c.bf16 %v738_v2, %v737_v1 }
  0xe3   : > { %1085 = vrot.lane.b32.xlu1 %v706_v3, %s2477_s20 }
  0xe4   : > { %v880_v10 = vpop.permute.xlu0 %879 }
  0xe5   : > { %v882_v6 = vpop.permute.xlu1 %881  ;;  %v1234_v33 = vsel %vm1224_vm5, %v1201_v30, %v880_v10 }
  0xe6   : > { %1131 = vrot.lane.b32.xlu0 %v609_v42, %s2478_s26  ;;  %v1236_v47 = vsel %vm1224_vm5, %v1203_v41, %v882_v6 }
  0xe7   : > { %799 = vrot.lane.b32.xlu1 %v561_v31, %s2471_s29 }
  0xe8   : > { %v928_v14 = vpop.permute.xlu0 %927 }
  0xe9   : > { %v930_v13 = vpop.permute.xlu1 %929  ;;  %v1267_v35 = vsel %vm1257_vm6, %v1234_v33, %v928_v14  ;;  %v548_v14 = vld [vmem:[#allocation2 + $0x181] sm:$0xff]  ;;  %v645_v33 = vld [vmem:[#allocation2 + $0x198] sm:$0xff] }
  0xea   : > { %1133 = vrot.lane.b32.xlu0 %v754_v11, %s2478_s26  ;;  %v1269_v46 = vsel %vm1257_vm6, %v1236_v47, %v930_v13  ;;  %v517_v13 = vpack.c.bf16 %v501_v8, %v500_v7  ;;  %v693_v47 = vld [vmem:[#allocation2 + $0x199] sm:$0xff] }
  0xeb   : > { %801 = vrot.lane.b32.xlu1 %v706_v3, %s2471_s29 }
  0xec   : > { %v976_v18 = vpop.permute.xlu0 %975 }
  0xed   : > { %v978_v17 = vpop.permute.xlu1 %977  ;;  %v1300_v12 = vsel %vm1290_vm7, %v1267_v35, %v976_v18  ;;  %v565_v18 = vpack.c.bf16 %v549_v15, %v548_v14 }
  0xee   : > { %847 = vrot.lane.b32.xlu0 %v609_v42, %s2472_s30  ;;  %v1302_v51 = vsel %vm1290_vm7, %v1269_v46, %v978_v17 }
  0xef   : > { %849 = vrot.lane.b32.xlu1 %v754_v11, %s2472_s30 }
  0xf0   : > { %v1024_v23 = vpop.permute.xlu0 %1023 }
  0xf1   : > { %v1026_v22 = vpop.permute.xlu1 %1025  ;;  %v1333_v42 = vsel %vm1323_vm8, %v1300_v12, %v1024_v23 }
  0xf2   : > { %895 = vrot.lane.b32.xlu0 %v2825_v48, %s2473_s4  ;;  %v1335_v54 = vsel %vm1323_vm8, %v1302_v51, %v1026_v22  ;;  %v597_v22 = vld [vmem:[#allocation2 + $0x18a] sm:$0xff] }
  0xf3   : > { %897 = vrot.lane.b32.xlu1 %v2845_v19, %s2473_s4  ;;  %v613_v30 = vpack.c.bf16 %v597_v22, %v596_v21 }
  0xf4   : > { %v1072_v34 = vpop.permute.xlu0 %1071 }
  0xf5   : > { %v1074_v31 = vpop.permute.xlu1 %1073  ;;  %v1366_v44 = vsel %vm1356_vm9, %v1333_v42, %v1072_v34  ;;  %v646_v34 = vld [vmem:[#allocation2 + $0x1a0] sm:$0xff] }
  0xf6   : > { %943 = vrot.lane.b32.xlu0 %v706_v3, %s2474_s5  ;;  %v1368_v57 = vsel %vm1356_vm9, %v1335_v54, %v1074_v31  ;;  %v662_v42 = vpack.c.bf16 %v646_v34, %v645_v33  ;;  %v741_v54 = vld [vmem:[#allocation2 + $0x19a] sm:$0xff] }
  0xf7   : > { %945 = vrot.lane.b32.xlu1 %v563_v25, %s2474_s5 }
  0xf8   : > { %v1120_v45 = vpop.permute.xlu0 %1119 }
  0xf9   : > { %v788_v43 = vpop.permute.xlu1 %787  ;;  %v1399_v24 = vsel %vm1389_vm10, %v1366_v44, %v1120_v45  ;;  %v694_v44 = vld [vmem:[#allocation2 + $0x1a1] sm:$0xff] }
  0xfa   : > { %991 = vrot.lane.b32.xlu0 %v754_v11, %s2475_s6  ;;  %2323 = vmatprep.mubr.msk.bf16.mxu0 %vm1442_vm11, %v1399_v24  ;;  %v1163_v20 = vsel %vm183_vm0, %v2704_v36, %v788_v43  ;;  %v710_v53 = vpack.c.bf16 %v694_v44, %v693_v47 }
  0xfb   : > { %993 = vrot.lane.b32.xlu1 %v611_v37, %s2475_s6 }
  0xfc   : > { %v1122_v56 = vpop.permute.xlu0 %1121 }
  0xfd   : > { %v790_v55 = vpop.permute.xlu1 %789  ;;  %v1401_v58 = vsel %vm1389_vm10, %v1368_v57, %v1122_v56 }
  0xfe   : > { %1039 = vrot.lane.b32.xlu0 %v2845_v19, %s2476_s9  ;;  %2324 = vmatmul.mubr.msk.bf16.gmra.mrb[8].mxu0 %vm1442_vm11, %v1401_v58  ;;  %v1166_v31 = vsel %vm183_vm0, %v2717_v50, %v790_v55  ;;  %v742_v55 = vld [vmem:[#allocation2 + $0x1a2] sm:$0xff] }
  0xff   : > { %1041 = vrot.lane.b32.xlu1 %v2869_v49, %s2476_s9  ;;  %v758_v58 = vpack.c.bf16 %v742_v55, %v741_v54 }
 0x100   : > { %v836_v61 = vpop.permute.xlu0 %835 }
 0x101   : > { %v838_v60 = vpop.permute.xlu1 %837  ;;  %v1205_v23 = vsel %vm1191_vm4, %v1163_v20, %v836_v61 }
 0x102   : > { %1087 = vrot.lane.b32.xlu0 %v563_v25, %s2477_s20  ;;  %v1207_v35 = vsel %vm1191_vm4, %v1166_v31, %v838_v60 }
 0x103   : > { %1089 = vrot.lane.b32.xlu1 %v708_v59, %s2477_s20 }
 0x104   : > { %v884_v3 = vpop.permute.xlu0 %883 }
 0x105   : > { %v886_v62 = vpop.permute.xlu1 %885  ;;  %v1238_v27 = vsel %vm1224_vm5, %v1205_v23, %v884_v3 }
 0x106   : > { %1135 = vrot.lane.b32.xlu0 %v611_v37, %s2478_s26  ;;  %v1240_v12 = vsel %vm1224_vm5, %v1207_v35, %v886_v62 }
 0x107   : > { %803 = vrot.lane.b32.xlu1 %v563_v25, %s2471_s29 }
 0x108   : > { %v932_v6 = vpop.permute.xlu0 %931 }
 0x109   : > { %v934_v5 = vpop.permute.xlu1 %933  ;;  %v1271_v29 = vsel %vm1257_vm6, %v1238_v27, %v932_v6 }
 0x10a   : > { %1137 = vrot.lane.b32.xlu0 %v756_v4, %s2478_s26  ;;  %v1273_v41 = vsel %vm1257_vm6, %v1240_v12, %v934_v5 }
 0x10b   : > { %805 = vrot.lane.b32.xlu1 %v708_v59, %s2471_s29  ;;  %s2988_s29 = scalar_lea.vmem %s3422_s2, %s2177_s25  ;;  %s2117_s25 = sshll.u32 %s169_s24, 1 }
 0x10c   : > { %v980_v11 = vpop.permute.xlu0 %979 }
 0x10d   : > { %v982_v10 = vpop.permute.xlu1 %981  ;;  %v1304_v36 = vsel %vm1290_vm7, %v1271_v29, %v980_v11 }
 0x10e   : > { %851 = vrot.lane.b32.xlu0 %v611_v37, %s2472_s30  ;;  %v1306_v43 = vsel %vm1290_vm7, %v1273_v41, %v982_v10 }
 0x10f   : > { %853 = vrot.lane.b32.xlu1 %v756_v4, %s2472_s30  ;;  %s3249_s30 = scalar_lea.vmem [#allocation3], %s2117_s25 }
 0x110   : > { %v1028_v17 = vpop.permute.xlu0 %1027 }
 0x111   : > { %v1030_v16 = vpop.permute.xlu1 %1029  ;;  %v1337_v37 = vsel %vm1323_vm8, %v1304_v36, %v1028_v17 }
 0x112   : > { %899 = vrot.lane.b32.xlu0 %v2869_v49, %s2473_s4  ;;  %v1339_v45 = vsel %vm1323_vm8, %v1306_v43, %v1030_v16 }
 0x113   : > { %901 = vrot.lane.b32.xlu1 %v517_v13, %s2473_s4  ;;  %s2174_s4 = sshll.u32 %s2521_s16, 5  ;;  %s2479_s16 = smov [#allocation3]  }
 0x114   : > { %v1076_v28 = vpop.permute.xlu0 %1075  ;;  %s3374_s8 = scalar_lea.hbm %s3423_s3, %s2174_s4  ;;  %s2410_s11 = sshll.u32 %s2479_s16, 4  ;;  %s2411_s11 = int_to_ptr.vmem [resolvable:$false] %s2410_s11 }
 0x115   : > { %v1078_v25 = vpop.permute.xlu1 %1077  ;;  %v1370_v39 = vsel %vm1356_vm9, %v1337_v37, %v1076_v28  ;;  %s2412_s17 = scalar_lea.vmem %s2411_s11, 64 }
 0x116   : > { %947 = vrot.lane.b32.xlu0 %v708_v59, %s2474_s5  ;;  %v1372_v24 = vsel %vm1356_vm9, %v1339_v45, %v1078_v25 }
 0x117   : > { %949 = vrot.lane.b32.xlu1 %v565_v18, %s2474_s5  ;;  %s2029_s5 = sshll.u32 %s3249_s30, 4  ;;  %s3376_s5 = int_to_ptr.vmem [resolvable:$true] %s2029_s5 }
 0x118   : > { %v1124_v40 = vpop.permute.xlu0 %1123  ;;  %s2406_s10 = scalar_lea.vmem %s3376_s5, 32  ;;  %p2413_p0 = scmp.lt.s32.totalorder %s3376_s5, %s2411_s11 }
 0x119   : > { %v792_v38 = vpop.permute.xlu1 %791  ;;  %v1403_v50 = vsel %vm1389_vm10, %v1370_v39, %v1124_v40  ;;  %p2407_p11 = scmp.ne.s32.totalorder %s3376_s5, %s2406_s10  ;;  %p2414_p1 = scmp.lt.s32.totalorder %s2412_s17, %s2406_s10 }
 0x11a   : > { %995 = vrot.lane.b32.xlu0 %v756_v4, %s2475_s6  ;;  %2327 = vmatprep.mubr.msk.bf16.mxu0 %vm1442_vm11, %v1403_v50  ;;  %v1169_v5 = vsel %vm183_vm0, %v2734_v63, %v792_v38 }
 0x11b   : > { %997 = vrot.lane.b32.xlu1 %v613_v30, %s2475_s6  ;;  %p2408_p12 = pnand %p2407_p11, %p2538_p5  ;;  %p2415_p2 = por %p2414_p1, %p2413_p0 }
 0x11c   : > { %v1126_v51 = vpop.permute.xlu0 %1125 }
 0x11d   : > { %v794_v46 = vpop.permute.xlu1 %793  ;;  %v1405_v52 = vsel %vm1389_vm10, %v1372_v24, %v1126_v51  ;;  %p2409_p13 = pneg %p2408_p12 }
 0x11e   : > { %1043 = vrot.lane.b32.xlu0 %v517_v13, %s2476_s9  ;;  %2328 = vmatmul.mubr.msk.bf16.gmra.mrb[12].mxu0 %vm1442_vm11, %v1405_v52  ;;  %v1172_v13 = vsel %vm183_vm0, %v2744_v9, %v794_v46 }
 0x11f   : > { %1045 = vrot.lane.b32.xlu1 %v662_v42, %s2476_s9  ;;  %s2013_s9 = scalar_lea.sflag [#allocation4], %s169_s24  ;;  %p2416_p3 = pnand %p2415_p2, %p2409_p13 }
 0x120   : > { %v840_v56 = vpop.permute.xlu0 %839 }
 0x121   : > { %v842_v57 = vpop.permute.xlu1 %841  ;;  %v1209_v6 = vsel %vm1191_vm4, %v1169_v5, %v840_v56 }
 0x122   : > { %1091 = vrot.lane.b32.xlu0 %v565_v18, %s2477_s20  ;;  %v1211_v15 = vsel %vm1191_vm4, %v1172_v13, %v842_v57 }
 0x123   : > { %1093 = vrot.lane.b32.xlu1 %v710_v53, %s2477_s20 }
 0x124   : > { %v888_v60 = vpop.permute.xlu0 %887 }
 0x125   : > { %v890_v59 = vpop.permute.xlu1 %889  ;;  %v1242_v8 = vsel %vm1224_vm5, %v1209_v6, %v888_v60 }
 0x126   : > { %1139 = vrot.lane.b32.xlu0 %v613_v30, %s2478_s26  ;;  %v1244_v63 = vsel %vm1224_vm5, %v1211_v15, %v890_v59 }
 0x127   : > { %1141 = vrot.lane.b32.xlu1 %v758_v58, %s2478_s26 }
 0x128   : > { %v936_v62 = vpop.permute.xlu0 %935 }
 0x129   : > { %v938_v61 = vpop.permute.xlu1 %937  ;;  %v1275_v11 = vsel %vm1257_vm6, %v1242_v8, %v936_v62 }
 0x12a   : > { %v1277_v21 = vsel %vm1257_vm6, %v1244_v63, %v938_v61 }
 0x12c   : > { %v984_v2 = vpop.permute.xlu0 %983 }
 0x12d   : > { %v986_v1 = vpop.permute.xlu1 %985  ;;  %v1308_v14 = vsel %vm1290_vm7, %v1275_v11, %v984_v2 }
 0x12e   : > { %v1310_v23 = vsel %vm1290_vm7, %v1277_v21, %v986_v1 }
 0x130   : > { %v1032_v4 = vpop.permute.xlu0 %1031 }
 0x131   : > { %v1034_v3 = vpop.permute.xlu1 %1033  ;;  %v1341_v16 = vsel %vm1323_vm8, %v1308_v14, %v1032_v4 }
 0x132   : > { %v1343_v9 = vsel %vm1323_vm8, %v1310_v23, %v1034_v3 }
 0x134   : > { %v1080_v10 = vpop.permute.xlu0 %1079 }
 0x135   : > { %v1082_v7 = vpop.permute.xlu1 %1081  ;;  %v1374_v18 = vsel %vm1356_vm9, %v1341_v16, %v1080_v10 }
 0x136   : > { %v1376_v27 = vsel %vm1356_vm9, %v1343_v9, %v1082_v7 }
 0x138   : > { %v1128_v20 = vpop.permute.xlu0 %1127 }
 0x139   : > { %v796_v17 = vpop.permute.xlu1 %795  ;;  %v1407_v22 = vsel %vm1389_vm10, %v1374_v18, %v1128_v20 }
 0x13a   : > { %2331 = vmatprep.mubr.msk.bf16.mxu1 %vm1442_vm11, %v1407_v22  ;;  %v1175_v40 = vsel %vm183_vm0, %v2758_v32, %v796_v17 }
 0x13c   : > { %v1130_v28 = vpop.permute.xlu0 %1129 }
 0x13d   : > { %v798_v25 = vpop.permute.xlu1 %797  ;;  %v1409_v29 = vsel %vm1389_vm10, %v1376_v27, %v1130_v28 }
 0x13e   : > { %2332 = vmatmul.mubr.msk.bf16.vlgmr.msra.gmra.mrb[0].mxu1 %vm1442_vm11, %v1409_v29  ;;  %v1178_v44 = vsel %vm183_vm0, %v2781_v0, %v798_v25 }
 0x140   : > { %v844_v31 = vpop.permute.xlu0 %843 }
 0x141   : > { %v846_v30 = vpop.permute.xlu1 %845  ;;  %v1213_v41 = vsel %vm1191_vm4, %v1175_v40, %v844_v31 }
 0x142   : > { %v1215_v46 = vsel %vm1191_vm4, %v1178_v44, %v846_v30 }
 0x144   : > { %v892_v33 = vpop.permute.xlu0 %891 }
 0x145   : > { %v894_v36 = vpop.permute.xlu1 %893  ;;  %v1246_v42 = vsel %vm1224_vm5, %v1213_v41, %v892_v33 }
 0x146   : > { %v1248_v32 = vsel %vm1224_vm5, %v1215_v46, %v894_v36 }
 0x148   : > { %v940_v35 = vpop.permute.xlu0 %939 }
 0x149   : > { %v942_v34 = vpop.permute.xlu1 %941  ;;  %v1279_v47 = vsel %vm1257_vm6, %v1246_v42, %v940_v35 }
 0x14a   : > { %v1281_v54 = vsel %vm1257_vm6, %v1248_v32, %v942_v34 }
 0x14c   : > { %v988_v38 = vpop.permute.xlu0 %987 }
 0x14d   : > { %v990_v37 = vpop.permute.xlu1 %989  ;;  %v1312_v45 = vsel %vm1290_vm7, %v1279_v47, %v988_v38 }
 0x14e   : > { %v1314_v57 = vsel %vm1290_vm7, %v1281_v54, %v990_v37 }
 0x150   : > { %v1036_v39 = vpop.permute.xlu0 %1035 }
 0x151   : > { %v1038_v12 = vpop.permute.xlu1 %1037  ;;  %v1345_v24 = vsel %vm1323_vm8, %v1312_v45, %v1036_v39 }
 0x152   : > { %v1347_v0 = vsel %vm1323_vm8, %v1314_v57, %v1038_v12 }
 0x154   : > { %v1084_v43 = vpop.permute.xlu0 %1083 }
 0x155   : > { %v1086_v50 = vpop.permute.xlu1 %1085  ;;  %v1378_v52 = vsel %vm1356_vm9, %v1345_v24, %v1084_v43 }
 0x156   : > { %v1380_v58 = vsel %vm1356_vm9, %v1347_v0, %v1086_v50 }
 0x158   : > { %v1132_v53 = vpop.permute.xlu0 %1131 }
 0x159   : > { %v800_v51 = vpop.permute.xlu1 %799  ;;  %v1411_v55 = vsel %vm1389_vm10, %v1378_v52, %v1132_v53 }
 0x15a   : > { %2335 = vmatprep.mubr.msk.bf16.mxu1 %vm1442_vm11, %v1411_v55  ;;  %v1181_v10 = vsel %vm183_vm0, %v2801_v26, %v800_v51 }
 0x15c   : > { %v1134_v59 = vpop.permute.xlu0 %1133 }
 0x15d   : > { %v802_v56 = vpop.permute.xlu1 %801  ;;  %v1413_v60 = vsel %vm1389_vm10, %v1380_v58, %v1134_v59 }
 0x15e   : > { %2336 = vmatmul.mubr.msk.bf16.gmra.mrb[4].mxu1 %vm1442_vm11, %v1413_v60  ;;  %v1184_v17 = vsel %vm183_vm0, %v2825_v48, %v802_v56 }
 0x160   : > { %v848_v62 = vpop.permute.xlu0 %847 }
 0x161   : > { %v850_v61 = vpop.permute.xlu1 %849  ;;  %v1217_v11 = vsel %vm1191_vm4, %v1181_v10, %v848_v62 }
 0x162   : > { %v1219_v18 = vsel %vm1191_vm4, %v1184_v17, %v850_v61 }
 0x164   : > { %v896_v2 = vpop.permute.xlu0 %895 }
 0x165   : > { %v898_v1 = vpop.permute.xlu1 %897  ;;  %v1250_v14 = vsel %vm1224_vm5, %v1217_v11, %v896_v2 }
 0x166   : > { %v1252_v26 = vsel %vm1224_vm5, %v1219_v18, %v898_v1 }
 0x168   : > { %v944_v4 = vpop.permute.xlu0 %943 }
 0x169   : > { %v946_v3 = vpop.permute.xlu1 %945  ;;  %v1283_v16 = vsel %vm1257_vm6, %v1250_v14, %v944_v4 }
 0x16a   : > { %v1285_v9 = vsel %vm1257_vm6, %v1252_v26, %v946_v3 }
 0x16c   : > { %v992_v6 = vpop.permute.xlu0 %991 }
 0x16d   : > { %v994_v5 = vpop.permute.xlu1 %993  ;;  %v1316_v63 = vsel %vm1290_vm7, %v1283_v16, %v992_v6 }
 0x16e   : > { %v1318_v27 = vsel %vm1290_vm7, %v1285_v9, %v994_v5 }
 0x170   : > { %v1040_v8 = vpop.permute.xlu0 %1039 }
 0x171   : > { %v1042_v7 = vpop.permute.xlu1 %1041  ;;  %v1349_v20 = vsel %vm1323_vm8, %v1316_v63, %v1040_v8 }
 0x172   : > { %v1351_v48 = vsel %vm1323_vm8, %v1318_v27, %v1042_v7 }
 0x174   : > { %v1088_v15 = vpop.permute.xlu0 %1087 }
 0x175   : > { %v1090_v13 = vpop.permute.xlu1 %1089  ;;  %v1382_v22 = vsel %vm1356_vm9, %v1349_v20, %v1088_v15 }
 0x176   : > { %v1384_v29 = vsel %vm1356_vm9, %v1351_v48, %v1090_v13 }
 0x178   : > { %v1136_v23 = vpop.permute.xlu0 %1135 }
 0x179   : > { %v804_v21 = vpop.permute.xlu1 %803  ;;  %v1415_v25 = vsel %vm1389_vm10, %v1382_v22, %v1136_v23 }
 0x17a   : > { %2339 = vmatprep.mubr.msk.bf16.mxu1 %vm1442_vm11, %v1415_v25  ;;  %v1187_v50 = vsel %vm183_vm0, %v2845_v19, %v804_v21 }
 0x17c   : > { %v1138_v30 = vpop.permute.xlu0 %1137 }
 0x17d   : > { %v806_v28 = vpop.permute.xlu1 %805  ;;  %v1417_v31 = vsel %vm1389_vm10, %v1384_v29, %v1138_v30 }
 0x17e   : > { %2340 = vmatmul.mubr.msk.bf16.gmra.mrb[8].mxu1 %vm1442_vm11, %v1417_v31  ;;  %v1190_v42 = vsel %vm183_vm0, %v2869_v49, %v806_v28 }
 0x180   : > { %v852_v33 = vpop.permute.xlu0 %851 }
 0x181   : > { %v854_v36 = vpop.permute.xlu1 %853  ;;  %v1221_v44 = vsel %vm1191_vm4, %v1187_v50, %v852_v33 }
 0x182   : > { %v1223_v47 = vsel %vm1191_vm4, %v1190_v42, %v854_v36 }
 0x184   : > { %v900_v35 = vpop.permute.xlu0 %899 }
 0x185   : > { %v902_v34 = vpop.permute.xlu1 %901  ;;  %v1254_v19 = vsel %vm1224_vm5, %v1221_v44, %v900_v35 }
 0x186   : > { %v1256_v24 = vsel %vm1224_vm5, %v1223_v47, %v902_v34 }
 0x188   : > { %v948_v38 = vpop.permute.xlu0 %947 }
 0x189   : > { %v950_v37 = vpop.permute.xlu1 %949  ;;  %v1287_v53 = vsel %vm1257_vm6, %v1254_v19, %v948_v38 }
 0x18a   : > { %v1289_v52 = vsel %vm1257_vm6, %v1256_v24, %v950_v37 }
 0x18c   : > { %v996_v39 = vpop.permute.xlu0 %995 }
 0x18d   : > { %v998_v12 = vpop.permute.xlu1 %997  ;;  %v1320_v60 = vsel %vm1290_vm7, %v1287_v53, %v996_v39 }
 0x18e   : > { %v1322_v0 = vsel %vm1290_vm7, %v1289_v52, %v998_v12 }
 0x190   : > { %v1044_v41 = vpop.permute.xlu0 %1043 }
 0x191   : > { %v1046_v40 = vpop.permute.xlu1 %1045  ;;  %v2994_v43 = vpop.f32.mrb[0].mxu0  ;;  %v1353_v1 = vsel %vm1323_vm8, %v1320_v60, %v1044_v41 }
 0x192   : > { %v2181_v45 = vpack.c.bf16 %v2994_v43, %v2994_v43  ;;  %v3000_v46 = vpop.f32.mrb[1].mxu0  ;;  %v1355_v61 = vsel %vm1323_vm8, %v1322_v0, %v1046_v40  ;;  %v1804_v2 = vsel %vm1191_vm4, %v2994_v43, 0.0 }
 0x193   : > { %v2179_v49 = vpack.c.bf16 %v3000_v46, %v3000_v46  ;;  %v3006_v51 = vpop.f32.mrb[2].mxu0  ;;  %v1801_v56 = vsel %vm1191_vm4, %v3000_v46, 0.0 }
 0x194   : > { %1771 = vst.msk [vmem:[%s2988_s29 + $0x8] sm:$0xf] %vm1768_vm12, %v2181_v45  ;;  %v2182_v54 = vpack.c.bf16 %v3006_v51, %v3006_v51  ;;  %v1092_v55 = vpop.permute.xlu0 %1091  ;;  %v3014_v57 = vpop.f32.mrb[3].mxu0  ;;  %v1806_v10 = vsel %vm1191_vm4, %v3006_v51, 0.0 }
 0x195   : > { %v1094_v32 = vpop.permute.xlu1 %1093  ;;  %1769 = vst.msk [vmem:[%s2988_s29] sm:$0xf] %vm1768_vm12, %v2179_v49  ;;  %v2180_v58 = vpack.c.bf16 %v3014_v57, %v3014_v57  ;;  %v1802_v59 = vsel %vm1191_vm4, %v3014_v57, 0.0  ;;  %v1386_v5 = vsel %vm1356_vm9, %v1353_v1, %v1092_v55 }
 0x196   : > { %1772 = vst.msk [vmem:[%s2988_s29 + $0xc] sm:$0xf] %vm1768_vm12, %v2182_v54  ;;  %v1803_v62 = vadd.f32 %v1802_v59, %v1801_v56  ;;  %v1388_v3 = vsel %vm1356_vm9, %v1355_v61, %v1094_v32 }
 0x197   : > { %1770 = vst.msk [vmem:[%s2988_s29 + $0x4] sm:$0xf] %vm1768_vm12, %v2180_v58 }
 0x198   : > { %v1805_v6 = vadd.f32 %v1804_v2, %v1803_v62  ;;  %v1140_v8 = vpop.permute.xlu0 %1139 }
 0x199   : > { %v1142_v4 = vpop.permute.xlu1 %1141  ;;  %v1419_v11 = vsel %vm1389_vm10, %v1386_v5, %v1140_v8 }
 0x19a   : > { %v1421_v7 = vsel %vm1389_vm10, %v1388_v3, %v1142_v4  ;;  %2343 = vmatprep.mubr.msk.bf16.mxu1 %vm1442_vm11, %v1419_v11  ;;  %v1807_v13 = vadd.f32 %v1806_v10, %v1805_v6 }
 0x19b   : > { %2344 = vmatmul.mubr.msk.bf16.gmra.mrb[12].mxu1 %vm1442_vm11, %v1421_v7 }
 0x1b1   : > { %v3042_v14 = vpop.f32.mrb[4].mxu0 }
 0x1b2   : > { %v2185_v15 = vpack.c.bf16 %v3042_v14, %v3042_v14  ;;  %v3046_v16 = vpop.f32.mrb[5].mxu0  ;;  %v1812_v25 = vsel %vm1191_vm4, %v3042_v14, 0.0 }
 0x1b3   : > { %v2183_v17 = vpack.c.bf16 %v3046_v16, %v3046_v16  ;;  %v1808_v63 = vsel %vm1191_vm4, %v3046_v16, 0.0  ;;  %v3052_v18 = vpop.f32.mrb[6].mxu0 }
 0x1b4   : > { %1775 = vst.msk [vmem:[%s2988_s29 + $0x18] sm:$0xf] %vm1768_vm12, %v2185_v15  ;;  %v1809_v20 = vadd.f32 %v1808_v63, %v1807_v13  ;;  %v2186_v21 = vpack.c.bf16 %v3052_v18, %v3052_v18  ;;  %v3058_v26 = vpop.f32.mrb[7].mxu0  ;;  %v1814_v48 = vsel %vm1191_vm4, %v3052_v18, 0.0 }
 0x1b5   : > { %1773 = vst.msk [vmem:[%s2988_s29 + $0x10] sm:$0xf] %vm1768_vm12, %v2183_v17  ;;  %v2184_v22 = vpack.c.bf16 %v3058_v26, %v3058_v26  ;;  %v1810_v23 = vsel %vm1191_vm4, %v3058_v26, 0.0 }
 0x1b6   : > { %1776 = vst.msk [vmem:[%s2988_s29 + $0x1c] sm:$0xf] %vm1768_vm12, %v2186_v21  ;;  %v1811_v9 = vadd.f32 %v1810_v23, %v1809_v20 }
 0x1b7   : > { %1774 = vst.msk [vmem:[%s2988_s29 + $0x14] sm:$0xf] %vm1768_vm12, %v2184_v22 }
 0x1b8   : > { %v1813_v27 = vadd.f32 %v1812_v25, %v1811_v9 }
 0x1ba   : > { %v1815_v28 = vadd.f32 %v1814_v48, %v1813_v27 }
 0x1d1   : > { %v3074_v29 = vpop.f32.mrb[8].mxu0 }
 0x1d2   : > { %v2189_v30 = vpack.c.bf16 %v3074_v29, %v3074_v29  ;;  %v3078_v31 = vpop.f32.mrb[9].mxu0  ;;  %v1820_v41 = vsel %vm1191_vm4, %v3074_v29, 0.0 }
 0x1d3   : > { %v2187_v36 = vpack.c.bf16 %v3078_v31, %v3078_v31  ;;  %v1816_v33 = vsel %vm1191_vm4, %v3078_v31, 0.0  ;;  %v3084_v34 = vpop.f32.mrb[10].mxu0 }
 0x1d4   : > { %1779 = vst.msk [vmem:[%s2988_s29 + $0x28] sm:$0xf] %vm1768_vm12, %v2189_v30  ;;  %v1817_v35 = vadd.f32 %v1816_v33, %v1815_v28  ;;  %v2190_v37 = vpack.c.bf16 %v3084_v34, %v3084_v34  ;;  %v3090_v38 = vpop.f32.mrb[11].mxu0  ;;  %v1822_v42 = vsel %vm1191_vm4, %v3084_v34, 0.0 }
 0x1d5   : > { %1777 = vst.msk [vmem:[%s2988_s29 + $0x20] sm:$0xf] %vm1768_vm12, %v2187_v36  ;;  %v2188_v12 = vpack.c.bf16 %v3090_v38, %v3090_v38  ;;  %v1818_v39 = vsel %vm1191_vm4, %v3090_v38, 0.0 }
 0x1d6   : > { %1780 = vst.msk [vmem:[%s2988_s29 + $0x2c] sm:$0xf] %vm1768_vm12, %v2190_v37  ;;  %v1819_v40 = vadd.f32 %v1818_v39, %v1817_v35 }
 0x1d7   : > { %1778 = vst.msk [vmem:[%s2988_s29 + $0x24] sm:$0xf] %vm1768_vm12, %v2188_v12 }
 0x1d8   : > { %v1821_v50 = vadd.f32 %v1820_v41, %v1819_v40 }
 0x1da   : > { %v1823_v47 = vadd.f32 %v1822_v42, %v1821_v50 }
 0x1f1   : > { %v3106_v44 = vpop.f32.mrb[12].mxu0 }
 0x1f2   : > { %v2193_v45 = vpack.c.bf16 %v3106_v44, %v3106_v44  ;;  %v3110_v24 = vpop.f32.mrb[13].mxu0  ;;  %v1828_v58 = vsel %vm1191_vm4, %v3106_v44, 0.0 }
 0x1f3   : > { %v2191_v19 = vpack.c.bf16 %v3110_v24, %v3110_v24  ;;  %v1824_v49 = vsel %vm1191_vm4, %v3110_v24, 0.0  ;;  %v3116_v32 = vpop.f32.mrb[14].mxu0 }
 0x1f4   : > { %1783 = vst.msk [vmem:[%s2988_s29 + $0x38] sm:$0xf] %vm1768_vm12, %v2193_v45  ;;  %v1825_v52 = vadd.f32 %v1824_v49, %v1823_v47  ;;  %v2194_v53 = vpack.c.bf16 %v3116_v32, %v3116_v32  ;;  %v3122_v54 = vpop.f32.mrb[15].mxu0  ;;  %v1830_v60 = vsel %vm1191_vm4, %v3116_v32, 0.0 }
 0x1f5   : > { %1781 = vst.msk [vmem:[%s2988_s29 + $0x30] sm:$0xf] %vm1768_vm12, %v2191_v19  ;;  %v2192_v55 = vpack.c.bf16 %v3122_v54, %v3122_v54  ;;  %v1826_v0 = vsel %vm1191_vm4, %v3122_v54, 0.0 }
 0x1f6   : > { %1784 = vst.msk [vmem:[%s2988_s29 + $0x3c] sm:$0xf] %vm1768_vm12, %v2194_v53  ;;  %v1827_v56 = vadd.f32 %v1826_v0, %v1825_v52 }
 0x1f7   : > { %1782 = vst.msk [vmem:[%s2988_s29 + $0x34] sm:$0xf] %vm1768_vm12, %v2192_v55 }
 0x1f8   : > { %v1829_v59 = vadd.f32 %v1828_v58, %v1827_v56 }
 0x1fa   : > { %v1831_v61 = vadd.f32 %v1830_v60, %v1829_v59 }
 0x211   : > { %v3138_v62 = vpop.f32.mrb[0].mxu1 }
 0x212   : > { %v2197_v1 = vpack.c.bf16 %v3138_v62, %v3138_v62  ;;  %v3142_v2 = vpop.f32.mrb[1].mxu1  ;;  %v1836_v15 = vsel %vm1191_vm4, %v3138_v62, 0.0 }
 0x213   : > { %v2195_v3 = vpack.c.bf16 %v3142_v2, %v3142_v2  ;;  %v1832_v4 = vsel %vm1191_vm4, %v3142_v2, 0.0  ;;  %v3148_v5 = vpop.f32.mrb[2].mxu1 }
 0x214   : > { %1787 = vst.msk [vmem:[%s2988_s29 + $0x48] sm:$0xf] %vm1768_vm12, %v2197_v1  ;;  %v1833_v6 = vadd.f32 %v1832_v4, %v1831_v61  ;;  %v2198_v7 = vpack.c.bf16 %v3148_v5, %v3148_v5  ;;  %v3154_v8 = vpop.f32.mrb[3].mxu1  ;;  %v1838_v63 = vsel %vm1191_vm4, %v3148_v5, 0.0 }
 0x215   : > { %1785 = vst.msk [vmem:[%s2988_s29 + $0x40] sm:$0xf] %vm1768_vm12, %v2195_v3  ;;  %v2196_v10 = vpack.c.bf16 %v3154_v8, %v3154_v8  ;;  %v1834_v11 = vsel %vm1191_vm4, %v3154_v8, 0.0 }
 0x216   : > { %1788 = vst.msk [vmem:[%s2988_s29 + $0x4c] sm:$0xf] %vm1768_vm12, %v2198_v7  ;;  %v1835_v13 = vadd.f32 %v1834_v11, %v1833_v6 }
 0x217   : > { %1786 = vst.msk [vmem:[%s2988_s29 + $0x44] sm:$0xf] %vm1768_vm12, %v2196_v10 }
 0x218   : > { %v1837_v17 = vadd.f32 %v1836_v15, %v1835_v13 }
 0x21a   : > { %v1839_v20 = vadd.f32 %v1838_v63, %v1837_v17 }
 0x231   : > { %v3170_v21 = vpop.f32.mrb[4].mxu1 }
 0x232   : > { %v2201_v22 = vpack.c.bf16 %v3170_v21, %v3170_v21  ;;  %v3174_v23 = vpop.f32.mrb[5].mxu1  ;;  %v1844_v37 = vsel %vm1191_vm4, %v3170_v21, 0.0 }
 0x233   : > { %v2199_v9 = vpack.c.bf16 %v3174_v23, %v3174_v23  ;;  %v1840_v25 = vsel %vm1191_vm4, %v3174_v23, 0.0  ;;  %v3180_v27 = vpop.f32.mrb[6].mxu1 }
 0x234   : > { %1791 = vst.msk [vmem:[%s2988_s29 + $0x58] sm:$0xf] %vm1768_vm12, %v2201_v22  ;;  %v1841_v48 = vadd.f32 %v1840_v25, %v1839_v20  ;;  %v2202_v28 = vpack.c.bf16 %v3180_v27, %v3180_v27  ;;  %v3186_v30 = vpop.f32.mrb[7].mxu1  ;;  %v1846_v39 = vsel %vm1191_vm4, %v3180_v27, 0.0 }
 0x235   : > { %1789 = vst.msk [vmem:[%s2988_s29 + $0x50] sm:$0xf] %vm1768_vm12, %v2199_v9  ;;  %v2200_v36 = vpack.c.bf16 %v3186_v30, %v3186_v30  ;;  %v1842_v33 = vsel %vm1191_vm4, %v3186_v30, 0.0 }
 0x236   : > { %1792 = vst.msk [vmem:[%s2988_s29 + $0x5c] sm:$0xf] %vm1768_vm12, %v2202_v28  ;;  %v1843_v35 = vadd.f32 %v1842_v33, %v1841_v48 }
 0x237   : > { %1790 = vst.msk [vmem:[%s2988_s29 + $0x54] sm:$0xf] %vm1768_vm12, %v2200_v36 }
 0x238   : > { %v1845_v12 = vadd.f32 %v1844_v37, %v1843_v35 }
 0x23a   : > { %v1847_v40 = vadd.f32 %v1846_v39, %v1845_v12 }
 0x251   : > { %v3202_v41 = vpop.f32.mrb[8].mxu1 }
 0x252   : > { %v2205_v50 = vpack.c.bf16 %v3202_v41, %v3202_v41  ;;  %v3206_v42 = vpop.f32.mrb[9].mxu1  ;;  %v1852_v58 = vsel %vm1191_vm4, %v3202_v41, 0.0 }
 0x253   : > { %v2203_v47 = vpack.c.bf16 %v3206_v42, %v3206_v42  ;;  %v1848_v45 = vsel %vm1191_vm4, %v3206_v42, 0.0  ;;  %v3212_v19 = vpop.f32.mrb[10].mxu1 }
 0x254   : > { %1795 = vst.msk [vmem:[%s2988_s29 + $0x68] sm:$0xf] %vm1768_vm12, %v2205_v50  ;;  %v1849_v49 = vadd.f32 %v1848_v45, %v1847_v40  ;;  %v2206_v52 = vpack.c.bf16 %v3212_v19, %v3212_v19  ;;  %v3218_v53 = vpop.f32.mrb[11].mxu1  ;;  %v1854_v60 = vsel %vm1191_vm4, %v3212_v19, 0.0 }
 0x255   : > { %1793 = vst.msk [vmem:[%s2988_s29 + $0x60] sm:$0xf] %vm1768_vm12, %v2203_v47  ;;  %v2204_v55 = vpack.c.bf16 %v3218_v53, %v3218_v53  ;;  %v1850_v0 = vsel %vm1191_vm4, %v3218_v53, 0.0 }
 0x256   : > { %1796 = vst.msk [vmem:[%s2988_s29 + $0x6c] sm:$0xf] %vm1768_vm12, %v2206_v52  ;;  %v1851_v56 = vadd.f32 %v1850_v0, %v1849_v49 }
 0x257   : > { %1794 = vst.msk [vmem:[%s2988_s29 + $0x64] sm:$0xf] %vm1768_vm12, %v2204_v55 }
 0x258   : > { %v1853_v59 = vadd.f32 %v1852_v58, %v1851_v56 }
 0x25a   : > { %v1855_v61 = vadd.f32 %v1854_v60, %v1853_v59 }
 0x26e   : > { %v2345_v1 = vpop.f32.mrb[12].mxu1 }
 0x26f   : > { %v2209_v3 = vpack.c.bf16 %v2345_v1, %v2345_v1  ;;  %v1625_v4 = vpop.f32.mrb[13].mxu1  ;;  %v1860_v22 = vsel %vm1191_vm4, %v2345_v1, 0.0 }
 0x270   : > { %v2207_v6 = vpack.c.bf16 %v1625_v4, %v1625_v4  ;;  %v1856_v7 = vsel %vm1191_vm4, %v1625_v4, 0.0  ;;  %v2346_v10 = vpop.f32.mrb[14].mxu1 }
 0x271   : > { %1799 = vst.msk [vmem:[%s2988_s29 + $0x78] sm:$0xf] %vm1768_vm12, %v2209_v3  ;;  %v1857_v11 = vadd.f32 %v1856_v7, %v1855_v61  ;;  %v2210_v13 = vpack.c.bf16 %v2346_v10, %v2346_v10  ;;  %v1628_v15 = vpop.f32.mrb[15].mxu1  ;;  %v1862_v25 = vsel %vm1191_vm4, %v2346_v10, 0.0 }
 0x272   : > { %1797 = vst.msk [vmem:[%s2988_s29 + $0x70] sm:$0xf] %vm1768_vm12, %v2207_v6  ;;  %v2208_v17 = vpack.c.bf16 %v1628_v15, %v1628_v15  ;;  %v1858_v63 = vsel %vm1191_vm4, %v1628_v15, 0.0 }
 0x273   : > { %1800 = vst.msk [vmem:[%s2988_s29 + $0x7c] sm:$0xf] %vm1768_vm12, %v2210_v13  ;;  %v1859_v20 = vadd.f32 %v1858_v63, %v1857_v11 }
 0x274   : > { %1798 = vst.msk [vmem:[%s2988_s29 + $0x74] sm:$0xf] %vm1768_vm12, %v2208_v17 }
 0x275   : > { %v1861_v9 = vadd.f32 %v1860_v22, %v1859_v20 }
 0x277   : > { %v1863_v48 = vadd.f32 %v1862_v25, %v1861_v9 }
 0x279   : > { %v1864_v28 = vrot.slane %v1863_v48, 4 }
 0x27b   : > { %v1865_v36 = vadd.f32 %v1864_v28, %v1863_v48 }
 0x27d   : > { %v1866_v33 = vrot.slane %v1865_v36, 2 }
 0x27f   : > { %v1867_v35 = vadd.f32 %v1866_v33, %v1865_v36 }
 0x281   : > { %v1868_v37 = vrot.slane %v1867_v35, 1 }
 0x283   : > { %v1869_v12 = vadd.f32 %v1868_v37, %v1867_v35 }
 0x285   : > { %v1870_v39 = vmul.f32 0.00390625, %v1869_v12  ;;  %2005 = vst.msk [vmem:[%s3249_s30] sm:$0x1] %vm2004_vm13, %v1869_v12 }
 0x287   : > { %v1871_v40 = vsub.f32 %v3000_v46, %v1870_v39  ;;  %v1872_v50 = vsub.f32 %v3014_v57, %v1870_v39  ;;  %v1873_v47 = vsub.f32 %v2994_v43, %v1870_v39  ;;  %v1874_v45 = vsub.f32 %v3006_v51, %v1870_v39 }
 0x288   : > { %v1875_v49 = vsub.f32 %v3046_v16, %v1870_v39  ;;  %v1876_v52 = vsub.f32 %v3058_v26, %v1870_v39  ;;  %v1877_v55 = vsub.f32 %v3042_v14, %v1870_v39  ;;  %v1878_v0 = vsub.f32 %v3052_v18, %v1870_v39 }
 0x289   : > { %v1879_v56 = vsub.f32 %v3078_v31, %v1870_v39  ;;  %v1880_v58 = vsub.f32 %v3090_v38, %v1870_v39  ;;  %v1881_v46 = vsub.f32 %v3074_v29, %v1870_v39  ;;  %v1882_v57 = vsub.f32 %v3084_v34, %v1870_v39 }
 0x28a   : > { %v1883_v43 = vsub.f32 %v3110_v24, %v1870_v39  ;;  %v1884_v51 = vsub.f32 %v3122_v54, %v1870_v39  ;;  %v1885_v16 = vsub.f32 %v3106_v44, %v1870_v39  ;;  %v1886_v26 = vsub.f32 %v3116_v32, %v1870_v39 }
 0x28b   : > { %v1887_v14 = vsub.f32 %v3142_v2, %v1870_v39  ;;  %v1888_v18 = vsub.f32 %v3154_v8, %v1870_v39  ;;  %v3272_v31 = vsub.f32 %v3138_v62, %v1870_v39  ;;  %v3275_v38 = vsub.f32 %v3148_v5, %v1870_v39 }
 0x28c   : > { %v3278_v29 = vsub.f32 %v3174_v23, %v1870_v39  ;;  %v3281_v34 = vsub.f32 %v3186_v30, %v1870_v39  ;;  %v3284_v44 = vsub.f32 %v3170_v21, %v1870_v39  ;;  %v3287_v24 = vsub.f32 %v3180_v27, %v1870_v39 }
 0x28d   : > { %v3290_v32 = vsub.f32 %v3206_v42, %v1870_v39  ;;  %v3293_v54 = vsub.f32 %v3218_v53, %v1870_v39  ;;  %v3296_v62 = vsub.f32 %v3202_v41, %v1870_v39  ;;  %v3299_v2 = vsub.f32 %v3212_v19, %v1870_v39 }
 0x28e   : > { %v3301_v5 = vsub.f32 %v1625_v4, %v1870_v39  ;;  %v3303_v8 = vsub.f32 %v1628_v15, %v1870_v39  ;;  %v3305_v21 = vsub.f32 %v2345_v1, %v1870_v39  ;;  %v3307_v23 = vsub.f32 %v2346_v10, %v1870_v39 }
 0x28f   : > { %v1903_v27 = vmul.f32 %v1871_v40, %v1871_v40  ;;  %v1904_v30 = vmul.f32 %v1872_v50, %v1872_v50  ;;  %v1905_v42 = vmul.f32 %v1873_v47, %v1873_v47  ;;  %v1906_v59 = vmul.f32 %v1874_v45, %v1874_v45 }
 0x290   : > { %v1907_v61 = vmul.f32 %v1875_v49, %v1875_v49  ;;  %v1908_v4 = vmul.f32 %v1876_v52, %v1876_v52  ;;  %v1909_v7 = vmul.f32 %v1877_v55, %v1877_v55  ;;  %v1910_v13 = vmul.f32 %v1878_v0, %v1878_v0 }
 0x291   : > { %v1935_v53 = vsel %vm1191_vm4, %v1903_v27, 0.0  ;;  %v1936_v41 = vsel %vm1191_vm4, %v1904_v30, 0.0  ;;  %v1938_v19 = vsel %vm1191_vm4, %v1905_v42, 0.0  ;;  %v1940_v6 = vsel %vm1191_vm4, %v1906_v59, 0.0 }
 0x292   : > { %v1937_v60 = vadd.f32 %v1936_v41, %v1935_v53  ;;  %v1942_v10 = vsel %vm1191_vm4, %v1907_v61, 0.0  ;;  %v1944_v15 = vsel %vm1191_vm4, %v1908_v4, 0.0  ;;  %v1911_v63 = vmul.f32 %v1879_v56, %v1879_v56 }
 0x293   : > { %v1946_v20 = vsel %vm1191_vm4, %v1909_v7, 0.0  ;;  %v1912_v9 = vmul.f32 %v1880_v58, %v1880_v58  ;;  %v1948_v25 = vsel %vm1191_vm4, %v1910_v13, 0.0  ;;  %v1913_v28 = vmul.f32 %v1881_v46, %v1881_v46 }
 0x294   : > { %v1939_v3 = vadd.f32 %v1938_v19, %v1937_v60  ;;  %v1950_v36 = vsel %vm1191_vm4, %v1911_v63, 0.0  ;;  %v1914_v35 = vmul.f32 %v1882_v57, %v1882_v57  ;;  %v1915_v39 = vmul.f32 %v1883_v43, %v1883_v43 }
 0x295   : > { %v1952_v37 = vsel %vm1191_vm4, %v1912_v9, 0.0  ;;  %v1954_v40 = vsel %vm1191_vm4, %v1913_v28, 0.0  ;;  %v1916_v47 = vmul.f32 %v1884_v51, %v1884_v51  ;;  %v1917_v52 = vmul.f32 %v1885_v16, %v1885_v16 }
 0x296   : > { %v1941_v1 = vadd.f32 %v1940_v6, %v1939_v3  ;;  %v1956_v45 = vsel %vm1191_vm4, %v1914_v35, 0.0  ;;  %v1958_v55 = vsel %vm1191_vm4, %v1915_v39, 0.0  ;;  %v1918_v56 = vmul.f32 %v1886_v26, %v1886_v26 }
 0x297   : > { %v1960_v58 = vsel %vm1191_vm4, %v1916_v47, 0.0  ;;  %v1919_v57 = vmul.f32 %v1887_v14, %v1887_v14  ;;  %v1962_v27 = vsel %vm1191_vm4, %v1917_v52, 0.0  ;;  %v1920_v43 = vmul.f32 %v1888_v18, %v1888_v18 }
 0x298   : > { %v1943_v11 = vadd.f32 %v1942_v10, %v1941_v1  ;;  %v1964_v42 = vsel %vm1191_vm4, %v1918_v56, 0.0  ;;  %v1921_v51 = vmul.f32 %v3272_v31, %v3272_v31  ;;  %v1922_v26 = vmul.f32 %v3275_v38, %v3275_v38 }
 0x299   : > { %v1966_v16 = vsel %vm1191_vm4, %v1919_v57, 0.0  ;;  %v1968_v41 = vsel %vm1191_vm4, %v1920_v43, 0.0  ;;  %v1923_v14 = vmul.f32 %v3278_v29, %v3278_v29  ;;  %v1924_v19 = vmul.f32 %v3281_v34, %v3281_v34 }
 0x29a   : > { %v1945_v17 = vadd.f32 %v1944_v15, %v1943_v11  ;;  %v1970_v18 = vsel %vm1191_vm4, %v1921_v51, 0.0  ;;  %v1972_v31 = vsel %vm1191_vm4, %v1922_v26, 0.0  ;;  %v1925_v4 = vmul.f32 %v3284_v44, %v3284_v44 }
 0x29b   : > { %v1974_v38 = vsel %vm1191_vm4, %v1923_v14, 0.0  ;;  %v1926_v1 = vmul.f32 %v3287_v24, %v3287_v24  ;;  %v1976_v29 = vsel %vm1191_vm4, %v1924_v19, 0.0  ;;  %v1927_v10 = vmul.f32 %v3290_v32, %v3290_v32 }
 0x29c   : > { %v1947_v22 = vadd.f32 %v1946_v20, %v1945_v17  ;;  %v1978_v34 = vsel %vm1191_vm4, %v1925_v4, 0.0  ;;  %v1928_v13 = vmul.f32 %v3293_v54, %v3293_v54  ;;  %v1929_v17 = vmul.f32 %v3296_v62, %v3296_v62 }
 0x29d   : > { %v1980_v44 = vsel %vm1191_vm4, %v1926_v1, 0.0  ;;  %v1982_v24 = vsel %vm1191_vm4, %v1927_v10, 0.0  ;;  %v1930_v20 = vmul.f32 %v3299_v2, %v3299_v2  ;;  %v1931_v9 = vmul.f32 %v3301_v5, %v3301_v5 }
 0x29e   : > { %v1949_v48 = vadd.f32 %v1948_v25, %v1947_v22  ;;  %v1984_v32 = vsel %vm1191_vm4, %v1928_v13, 0.0  ;;  %v1986_v54 = vsel %vm1191_vm4, %v1929_v17, 0.0  ;;  %v1933_v2 = vmul.f32 %v3305_v21, %v3305_v21 }
 0x29f   : > { %v1988_v62 = vsel %vm1191_vm4, %v1930_v20, 0.0  ;;  %v1934_v5 = vmul.f32 %v3307_v23, %v3307_v23 }
 0x2a0   : > { %v1951_v33 = vadd.f32 %v1950_v36, %v1949_v48  ;;  %v1932_v48 = vmul.f32 %v3303_v8, %v3303_v8  ;;  %v1990_v36 = vsel %vm1191_vm4, %v1931_v9, 0.0  ;;  %v1994_v8 = vsel %vm1191_vm4, %v1933_v2, 0.0 }
 0x2a1   : > { %v1996_v39 = vsel %vm1191_vm4, %v1934_v5, 0.0 }
 0x2a2   : > { %v1953_v12 = vadd.f32 %v1952_v37, %v1951_v33  ;;  %v1992_v35 = vsel %vm1191_vm4, %v1932_v48, 0.0 }
 0x2a4   : > { %v1955_v50 = vadd.f32 %v1954_v40, %v1953_v12 }
 0x2a6   : > { %v1957_v49 = vadd.f32 %v1956_v45, %v1955_v50 }
 0x2a8   : > { %v1959_v0 = vadd.f32 %v1958_v55, %v1957_v49 }
 0x2aa   : > { %v1961_v46 = vadd.f32 %v1960_v58, %v1959_v0 }
 0x2ac   : > { %v1963_v30 = vadd.f32 %v1962_v27, %v1961_v46 }
 0x2ae   : > { %v1965_v59 = vadd.f32 %v1964_v42, %v1963_v30 }
 0x2b0   : > { %v1967_v53 = vadd.f32 %v1966_v16, %v1965_v59 }
 0x2b2   : > { %v1969_v60 = vadd.f32 %v1968_v41, %v1967_v53 }
 0x2b4   : > { %v1971_v61 = vadd.f32 %v1970_v18, %v1969_v60 }
 0x2b6   : > { %v1973_v3 = vadd.f32 %v1972_v31, %v1971_v61 }
 0x2b8   : > { %v1975_v6 = vadd.f32 %v1974_v38, %v1973_v3 }
 0x2ba   : > { %v1977_v7 = vadd.f32 %v1976_v29, %v1975_v6 }
 0x2bc   : > { %v1979_v11 = vadd.f32 %v1978_v34, %v1977_v7 }
 0x2be   : > { %v1981_v15 = vadd.f32 %v1980_v44, %v1979_v11 }
 0x2c0   : > { %v1983_v63 = vadd.f32 %v1982_v24, %v1981_v15 }
 0x2c2   : > { %v1985_v22 = vadd.f32 %v1984_v32, %v1983_v63 }
 0x2c4   : > { %v1987_v25 = vadd.f32 %v1986_v54, %v1985_v22 }
 0x2c6   : > { %v1989_v28 = vadd.f32 %v1988_v62, %v1987_v25 }
 0x2c8   : > { %v1991_v33 = vadd.f32 %v1990_v36, %v1989_v28 }
 0x2ca   : > { %v1993_v37 = vadd.f32 %v1992_v35, %v1991_v33 }
 0x2cc   : > { %v1995_v12 = vadd.f32 %v1994_v8, %v1993_v37 }
 0x2ce   : > { %v1997_v40 = vadd.f32 %v1996_v39, %v1995_v12 }
 0x2d0   : > { %v1998_v50 = vrot.slane %v1997_v40, 4 }
 0x2d2   : > { %v1999_v21 = vadd.f32 %v1998_v50, %v1997_v40 }
 0x2d4   : > { %v2000_v47 = vrot.slane %v1999_v21, 2 }
 0x2d6   : > { %v2001_v45 = vadd.f32 %v2000_v47, %v1999_v21 }
 0x2d8   : > { %v2002_v49 = vrot.slane %v2001_v45, 1 }
 0x2da   : > { %v2003_v23 = vadd.f32 %v2002_v49, %v2001_v45 }
 0x2dc   : > { %2006 = vst.msk [vmem:[%s3249_s30 + $0x1] sm:$0x1] %vm2004_vm13, %v2003_v23 }
 0x2dd   : > { %2419 = shalt.err (!%p2416_p3)
}
 0x2de   : > { %s2420_s19 = scalar_lea.hbm %s3374_s8, 32  ;;  %s2424_s27 = scalar_lea.hbm %s3423_s3, 64 }
 0x2df   : > { %p2421_p4 = scmp.ne.s32.totalorder %s3374_s8, %s2420_s19  ;;  %p2425_p9 = scmp.lt.u32.totalorder %s3374_s8, %s3423_s3 }
 0x2e0   : > { %p2426_p10 = scmp.lt.u32.totalorder %s2424_s27, %s2420_s19  ;;  %p2428_p12 = scmp.lt.u32.totalorder %s2420_s19, %s3374_s8 }
 0x2e1   : > { %p2422_p7 = pnand %p2421_p4, %p2538_p5 }
 0x2e2   : > { %p2427_p11 = por %p2426_p10, %p2425_p9 }
 0x2e3   : > { %p2423_p8 = pneg %p2422_p7 }
 0x2e4   : > { %p2429_p13 = por %p2428_p12, %p2427_p11 }
 0x2e6   : > { %p2430_p0 = pnand %p2429_p13, %p2423_p8 }
 0x2e8   : > { %2433 = shalt.err (!%p2430_p0)
}
 0x2e9   : > { %2355 = dma.vmem_to_hbm [thread:$0]  (%p2538_p5), %s3376_s5, 32, %s3374_s8, %s2013_s9  }
 0x2ea PF: > { %p2361_p1 = scmp.ge.s32.totalorder %s2468_s15, 2  ;;  %s2049_s24 = sand.u32 1, %s2456_s12  }
 0x2eb   : > { %s2050_s25 = scalar_lea.sflag [#allocation4], %s2049_s24 }
 0x2ec   : > { %p2358_p2 = pnand %p2361_p1, %p2542_p6 }
 0x2ee   : > { %2451 = dma.done.wait (!%p2358_p2), %s2050_s25, 32  }
 0x2ef   : > { %2453 = vsyncadd (!%p2358_p2), %s2050_s25, 4294967264  ;;  %p14_p3 = scmp.ge.s32.totalorder %s2525_s18, 4   ;;  %s3426_s12 = smov %s2460_s13 }
 0x2f0   : > { %s3427_s13 = smov %s2464_s14  ;;  %s3428_s14 = smov %s2536_s21 }
 0x2f1   : > { %s3429_s15 = smov %s2525_s18  ;;  %16 = sbr.rel (!%p14_p3) target bundleno = 3 (0x3), region = 78 }
 0x2f8   :  { %2055 = vsyncpa [#allocation4], 1 }
 0x2f9   :  { %2057 = vsyncpa [#allocation4 + $0x1], 1 }

</bundles_post_ra>
